<compile_context>
chip_gen: v7x
topology: tpu7x:2x2x1
jax: 0.10.0
libtpu: 0.0.40
codegen_flags: <defaults>
</compile_context>

<pallas_src>
import functools

import jax
import jax.numpy as jnp
from jax.experimental import pallas as pl
from jax.experimental.pallas import tpu as pltpu

EPS = 1e-5
DILS = (1, 2, 3)   # DILS[0] must be 1: the fuse conv reuses its tap masks


# ----------------------------------------------------------------------------
# Fused Pallas kernel: 3 dilated conv+BN+ReLU branches + concat + fuse conv
# + residual + BN + ReLU, for `nB` images per grid step.
# ----------------------------------------------------------------------------
def _dilated_block_kernel(x_ref, masks_ref, wb_ref, bb_ref, wf_ref, sf_ref,
                          bf_ref, out_ref, cols, o_buf, *, width):
    """
    x_ref    : (nB, Cin, HW)       images, flattened spatial on lanes
    masks_ref: (27, HW)            in-bounds masks, row = d_idx*9 + kh*3 + kw
    wb_ref   : (3, Cout, 9*Cin)    per-dilation branch weights (BN scale folded)
    bb_ref   : (3*Cout, 1)         folded branch BN bias
    wf_ref   : (Cout, 9*3*Cout)    fuse-conv weight (final BN scale folded)
    sf_ref   : (Cout, 1)           final BN scale (applied to the residual x)
    bf_ref   : (Cout, 1)           folded final BN bias
    out_ref  : (nB, Cout, HW)
    cols     : VMEM (9*3*Cout, nB*HW)  shared im2col scratch (branches + fuse)
    o_buf    : VMEM (3*Cout, nB*HW)    cat(o1, o2, o3) after BN + ReLU (f32)
    """
    nB, cin, HW = x_ref.shape
    cout = out_ref.shape[1]
    c3 = 3 * cout

    def shifted_taps(img, dil, mask_base, chans, b):
        # img: (chans, HW). Write the 9 taps (kh, kw) of dilation `dil` into
        # cols[t*chans:(t+1)*chans, b*HW:(b+1)*HW]; zero padding via masks.
        for kh in range(3):
            for kw in range(3):
                t = kh * 3 + kw
                off = (kh - 1) * dil * width + (kw - 1) * dil
                if off == 0:
                    sh = img
                else:
                    # out[p] = img[(p + off) % HW]; wrapped lanes are masked.
                    sh = pltpu.roll(img, shift=(-off) % HW, axis=1)
                m = masks_ref[mask_base + t:mask_base + t + 1, :]   # (1, HW)
                cols[t * chans:(t + 1) * chans, b * HW:(b + 1) * HW] = \
                    (sh * m).astype(cols.dtype)

    # ---- branch stage: three dilated 3x3 convs + folded BN + ReLU ----------
    for di, d in enumerate(DILS):
        for b in range(nB):
            shifted_taps(x_ref[b], d, di * 9, cin, b)
        acc = jnp.dot(wb_ref[di], cols[0:9 * cin, :],
                      preferred_element_type=jnp.float32)      # (Cout, nB*HW)
        o_buf[di * cout:(di + 1) * cout, :] = jnp.maximum(
            acc + bb_ref[di * cout:(di + 1) * cout, :], 0.0
        ).astype(o_buf.dtype)

    # ---- fuse 3x3 conv on cat(o1,o2,o3) + residual + folded BN + ReLU ------
    for b in range(nB):
        shifted_taps(o_buf[:, b * HW:(b + 1) * HW], 1, 0, c3, b)
    acc = jnp.dot(wf_ref[...], cols[...],
                  preferred_element_type=jnp.float32)          # (Cout, nB*HW)
    for b in range(nB):
        res = x_ref[b].astype(jnp.float32)                     # Cin == Cout
        y = acc[:, b * HW:(b + 1) * HW] + res * sf_ref[...] + bf_ref[...]
        out_ref[b] = jnp.maximum(y, 0.0).astype(out_ref.dtype)


# ----------------------------------------------------------------------------
# Wrapper: BN folding, weight packing, tap masks, pallas_call glue
# ----------------------------------------------------------------------------
def _fold_bn(conv_bias, gamma, beta, mean, var):
    scale = gamma / jnp.sqrt(var + EPS)
    bias = scale * (conv_bias - mean) + beta
    return scale, bias


def _tap_masks(H, W, dils):
    """In-bounds mask per (dilation, kh, kw) tap, flattened to (27, H*W)."""
    i = jnp.arange(H, dtype=jnp.int32).reshape(H, 1)
    j = jnp.arange(W, dtype=jnp.int32).reshape(1, W)
    rows = []
    for d in dils:
        for kh in range(3):
            for kw in range(3):
                dr, dc = (kh - 1) * d, (kw - 1) * d
                ok = ((i + dr >= 0) & (i + dr < H) &
                      (j + dc >= 0) & (j + dc < W))
                rows.append(ok.reshape(H * W))
    return jnp.stack(rows, axis=0).astype(jnp.float32)          # (27, H*W)


def dilated_block_pallas(x_nchw, params, *, images_per_step=1, mxu_dtype=None):
    """DilatedBlock forward (eval-mode BN), NCHW in / NCHW out, one kernel."""
    N, cin, H, W = x_nchw.shape
    cout = params["w1"].shape[0]
    assert cin == cout, "residual x + conv(o) requires in_ch == out_ch"
    c3 = 3 * cout
    HW = H * W
    nB = images_per_step
    assert N % nB == 0
    dt = x_nchw.dtype
    cdt = jnp.dtype(mxu_dtype) if mxu_dtype is not None else dt  # MXU operand dtype

    # Fold eval-mode BN: scale into the conv weights, rest into a bias vector.
    s1, b1 = _fold_bn(params["b1"], *params["bn1"])
    s2, b2 = _fold_bn(params["b2"], *params["bn2"])
    s3, b3 = _fold_bn(params["b3"], *params["bn3"])
    sf, bf = _fold_bn(params["bf"], *params["bnf"])

    def pack(w_oihw, scale):        # OIHW -> (Cout, 9*Cin), (kh, kw, cin)-major
        co = w_oihw.shape[0]
        wm = jnp.transpose(w_oihw, (0, 2, 3, 1)).reshape(co, -1)
        return (scale[:, None] * wm).astype(cdt)

    wb = jnp.stack([pack(params["w1"], s1),
                    pack(params["w2"], s2),
                    pack(params["w3"], s3)])                    # (3, Cout, 9*Cin)
    bb = jnp.concatenate([b1, b2, b3]).reshape(c3, 1).astype(jnp.float32)
    wf = pack(params["wf"], sf)                                 # (Cout, 9*3*Cout)
    sf_col = sf.reshape(cout, 1).astype(jnp.float32)
    bf_col = bf.reshape(cout, 1).astype(jnp.float32)

    masks = _tap_masks(H, W, DILS)                              # (27, HW) f32
    x_flat = x_nchw.reshape(N, cin, HW)                         # free reshape

    kernel = functools.partial(_dilated_block_kernel, width=W)
    out = pl.pallas_call(
        kernel,
        out_shape=jax.ShapeDtypeStruct((N, cout, HW), dt),
        grid=(N // nB,),
        in_specs=[
            pl.BlockSpec((nB, cin, HW), lambda n: (n, 0, 0)),
            pl.BlockSpec((len(DILS) * 9, HW), lambda n: (0, 0)),
            pl.BlockSpec((3, cout, 9 * cin), lambda n: (0, 0, 0)),
            pl.BlockSpec((c3, 1), lambda n: (0, 0)),
            pl.BlockSpec((cout, 9 * c3), lambda n: (0, 0)),
            pl.BlockSpec((cout, 1), lambda n: (0, 0)),
            pl.BlockSpec((cout, 1), lambda n: (0, 0)),
        ],
        out_specs=pl.BlockSpec((nB, cout, HW), lambda n: (n, 0, 0)),
        scratch_shapes=[
            pltpu.VMEM((9 * c3, nB * HW), cdt),       # shared im2col scratch
            pltpu.VMEM((c3, nB * HW), jnp.float32),   # cat(o1, o2, o3)
        ],
        compiler_params=pltpu.CompilerParams(
            dimension_semantics=("parallel",),        # batch axis -> v7x 2 TCs
        ),
    )(x_flat, masks, wb, bb, wf, sf_col, bf_col)

    return out.reshape(N, cout, H, W)                           # free reshape


# ----------------------------------------------------------------------------
# Pure-JAX reference (NCHW, mirrors the PyTorch module in eval mode)
# ----------------------------------------------------------------------------
def _ref_conv(x, w_oihw, b, dil):
    y = jax.lax.conv_general_dilated(
        x, w_oihw, window_strides=(1, 1),
        padding=((dil, dil), (dil, dil)), rhs_dilation=(dil, dil),
        dimension_numbers=("NCHW", "OIHW", "NCHW"))
    return y + b[None, :, None, None]


def _ref_bn(x, gamma, beta, mean, var):
    return ((x - mean[None, :, None, None]) /
            jnp.sqrt(var[None, :, None, None] + EPS)
            ) * gamma[None, :, None, None] + beta[None, :, None, None]


def dilated_block_ref(x, p):
    def branch(w, b, bn, dil):
        return jax.nn.relu(_ref_bn(_ref_conv(x, w, b, dil), *bn))

    o1 = branch(p["w1"], p["b1"], p["bn1"], 1)
    o2 = branch(p["w2"], p["b2"], p["bn2"], 2)
    o3 = branch(p["w3"], p["b3"], p["bn3"], 3)
    o = jnp.concatenate([o1, o2, o3], axis=1)
    o = _ref_conv(o, p["wf"], p["bf"], 1)
    return jax.nn.relu(_ref_bn(x + o, *p["bnf"]))


# ----------------------------------------------------------------------------
# Deterministic parameter construction + smoke test
# ----------------------------------------------------------------------------
def make_params(key, in_ch, out_ch):
    ks = list(jax.random.split(key, 32))
    it = iter(ks)

    def conv_w(cout, cin):
        return 0.1 * jax.random.normal(next(it), (cout, cin, 3, 3), jnp.float32)

    def vec(c, scale=0.1, base=0.0):
        return base + scale * jax.random.normal(next(it), (c,), jnp.float32)

    def bn(c):
        gamma = vec(c, 0.1, 1.0)
        beta = vec(c, 0.1, 0.0)
        mean = vec(c, 0.1, 0.0)
        var = jnp.abs(vec(c, 0.1, 0.0)) + 1.0
        return (gamma, beta, mean, var)

    return {
        "w1": conv_w(out_ch, in_ch), "b1": vec(out_ch), "bn1": bn(out_ch),
        "w2": conv_w(out_ch, in_ch), "b2": vec(out_ch), "bn2": bn(out_ch),
        "w3": conv_w(out_ch, in_ch), "b3": vec(out_ch), "bn3": bn(out_ch),
        "wf": conv_w(out_ch, 3 * out_ch), "bf": vec(out_ch), "bnf": bn(out_ch),
    }


if __name__ == "__main__":
    in_ch = out_ch = 8          # residual x + conv(o) requires in_ch == out_ch
    N, H, W = 2, 16, 16

    key = jax.random.PRNGKey(0)
    kp, kx = jax.random.split(key)
    params = make_params(kp, in_ch, out_ch)
    x = jax.random.normal(kx, (N, in_ch, H, W), jnp.float32)

    fwd = jax.jit(dilated_block_pallas)
    out = jax.block_until_ready(fwd(x, params))

    ref = dilated_block_ref(x, params)
    assert out.shape == (N, out_ch, H, W)
    max_err = float(jnp.max(jnp.abs(out - ref)))
    assert jnp.allclose(out, ref, atol=1e-3, rtol=1e-3), max_err

    print("KERNEL_OK")
</pallas_src>

<mosaic_0001>
module attributes {stable_mosaic.version = 11 : i64} {
  func.func @_dilated_block_kernel(%arg0: i32, %arg1: memref<1x8x256xf32, #tpu.memory_space<vmem>>, %arg2: memref<27x256xf32, #tpu.memory_space<vmem>>, %arg3: memref<3x8x72xf32, #tpu.memory_space<vmem>>, %arg4: memref<24x1xf32, #tpu.memory_space<vmem>>, %arg5: memref<8x216xf32, #tpu.memory_space<vmem>>, %arg6: memref<8x1xf32, #tpu.memory_space<vmem>>, %arg7: memref<8x1xf32, #tpu.memory_space<vmem>>, %arg8: memref<1x8x256xf32, #tpu.memory_space<vmem>>, %arg9: memref<216x256xf32, #tpu.memory_space<vmem>>, %arg10: memref<24x256xf32, #tpu.memory_space<vmem>>) attributes {dimension_semantics = [#tpu.dimension_semantics<parallel>], iteration_bounds = array<i64: 2>, scalar_prefetch = 0 : i64, scratch_operands = 2 : i64, tpu.core_type = #tpu.core_type<tc>, window_params = [{transform_indices = @transform_0, window_bounds = array<i64: 1, 8, 256>}, {pipeline_mode = #tpu.pipeline_mode<synchronous>, transform_indices = @transform_1, window_bounds = array<i64: 27, 256>}, {pipeline_mode = #tpu.pipeline_mode<synchronous>, transform_indices = @transform_2, window_bounds = array<i64: 3, 8, 72>}, {pipeline_mode = #tpu.pipeline_mode<synchronous>, transform_indices = @transform_3, window_bounds = array<i64: 24, 1>}, {pipeline_mode = #tpu.pipeline_mode<synchronous>, transform_indices = @transform_4, window_bounds = array<i64: 8, 216>}, {pipeline_mode = #tpu.pipeline_mode<synchronous>, transform_indices = @transform_5, window_bounds = array<i64: 8, 1>}, {pipeline_mode = #tpu.pipeline_mode<synchronous>, transform_indices = @transform_6, window_bounds = array<i64: 8, 1>}, {transform_indices = @transform_7, window_bounds = array<i64: 1, 8, 256>}]} {
    %c0 = arith.constant 0 : index
    %c0_0 = arith.constant 0 : index
    %c0_1 = arith.constant 0 : index
    %0 = vector.load %arg1[%c0, %c0_0, %c0_1] : memref<1x8x256xf32, #tpu.memory_space<vmem>>, vector<1x8x256xf32>
    %1 = vector.shape_cast %0 : vector<1x8x256xf32> to vector<8x256xf32>
    %c17_i32 = arith.constant 17 : i32
    %2 = tpu.dynamic_rotate %1 by %c17_i32 dim 1 : vector<8x256xf32>, i32 -> vector<8x256xf32>
    %c0_2 = arith.constant 0 : index
    %c0_3 = arith.constant 0 : index
    %3 = vector.load %arg2[%c0_2, %c0_3] : memref<27x256xf32, #tpu.memory_space<vmem>>, vector<1x256xf32>
    %4 = vector.broadcast %3 : vector<1x256xf32> to vector<8x256xf32>
    %5 = arith.mulf %2, %4 : vector<8x256xf32>
    %c0_4 = arith.constant 0 : index
    %c0_5 = arith.constant 0 : index
    %6 = vector.load %arg9[%c0_4, %c0_5] : memref<216x256xf32, #tpu.memory_space<vmem>>, vector<8x256xf32>
    tpu.vector_store %arg9[%c0_4, %c0_5], %5 {strides = array<i32>} : memref<216x256xf32, #tpu.memory_space<vmem>>, vector<8x256xf32>,
    %c16_i32 = arith.constant 16 : i32
    %7 = tpu.dynamic_rotate %1 by %c16_i32 dim 1 : vector<8x256xf32>, i32 -> vector<8x256xf32>
    %c1 = arith.constant 1 : index
    %c0_6 = arith.constant 0 : index
    %8 = vector.load %arg2[%c1, %c0_6] : memref<27x256xf32, #tpu.memory_space<vmem>>, vector<1x256xf32>
    %9 = vector.broadcast %8 : vector<1x256xf32> to vector<8x256xf32>
    %10 = arith.mulf %7, %9 : vector<8x256xf32>
    %c8 = arith.constant 8 : index
    %c0_7 = arith.constant 0 : index
    %11 = vector.load %arg9[%c8, %c0_7] : memref<216x256xf32, #tpu.memory_space<vmem>>, vector<8x256xf32>
    tpu.vector_store %arg9[%c8, %c0_7], %10 {strides = array<i32>} : memref<216x256xf32, #tpu.memory_space<vmem>>, vector<8x256xf32>,
    %c15_i32 = arith.constant 15 : i32
    %12 = tpu.dynamic_rotate %1 by %c15_i32 dim 1 : vector<8x256xf32>, i32 -> vector<8x256xf32>
    %c2 = arith.constant 2 : index
    %c0_8 = arith.constant 0 : index
    %13 = vector.load %arg2[%c2, %c0_8] : memref<27x256xf32, #tpu.memory_space<vmem>>, vector<1x256xf32>
    %14 = vector.broadcast %13 : vector<1x256xf32> to vector<8x256xf32>
    %15 = arith.mulf %12, %14 : vector<8x256xf32>
    %c16 = arith.constant 16 : index
    %c0_9 = arith.constant 0 : index
    %16 = vector.load %arg9[%c16, %c0_9] : memref<216x256xf32, #tpu.memory_space<vmem>>, vector<8x256xf32>
    tpu.vector_store %arg9[%c16, %c0_9], %15 {strides = array<i32>} : memref<216x256xf32, #tpu.memory_space<vmem>>, vector<8x256xf32>,
    %c1_i32 = arith.constant 1 : i32
    %17 = tpu.dynamic_rotate %1 by %c1_i32 dim 1 : vector<8x256xf32>, i32 -> vector<8x256xf32>
    %c3 = arith.constant 3 : index
    %c0_10 = arith.constant 0 : index
    %18 = vector.load %arg2[%c3, %c0_10] : memref<27x256xf32, #tpu.memory_space<vmem>>, vector<1x256xf32>
    %19 = vector.broadcast %18 : vector<1x256xf32> to vector<8x256xf32>
    %20 = arith.mulf %17, %19 : vector<8x256xf32>
    %c24 = arith.constant 24 : index
    %c0_11 = arith.constant 0 : index
    %21 = vector.load %arg9[%c24, %c0_11] : memref<216x256xf32, #tpu.memory_space<vmem>>, vector<8x256xf32>
    tpu.vector_store %arg9[%c24, %c0_11], %20 {strides = array<i32>} : memref<216x256xf32, #tpu.memory_space<vmem>>, vector<8x256xf32>,
    %c4 = arith.constant 4 : index
    %c0_12 = arith.constant 0 : index
    %22 = vector.load %arg2[%c4, %c0_12] : memref<27x256xf32, #tpu.memory_space<vmem>>, vector<1x256xf32>
    %23 = vector.broadcast %22 : vector<1x256xf32> to vector<8x256xf32>
    %24 = arith.mulf %1, %23 : vector<8x256xf32>
    %c32 = arith.constant 32 : index
    %c0_13 = arith.constant 0 : index
    %25 = vector.load %arg9[%c32, %c0_13] : memref<216x256xf32, #tpu.memory_space<vmem>>, vector<8x256xf32>
    tpu.vector_store %arg9[%c32, %c0_13], %24 {strides = array<i32>} : memref<216x256xf32, #tpu.memory_space<vmem>>, vector<8x256xf32>,
    %c255_i32 = arith.constant 255 : i32
    %26 = tpu.dynamic_rotate %1 by %c255_i32 dim 1 : vector<8x256xf32>, i32 -> vector<8x256xf32>
    %c5 = arith.constant 5 : index
    %c0_14 = arith.constant 0 : index
    %27 = vector.load %arg2[%c5, %c0_14] : memref<27x256xf32, #tpu.memory_space<vmem>>, vector<1x256xf32>
    %28 = vector.broadcast %27 : vector<1x256xf32> to vector<8x256xf32>
    %29 = arith.mulf %26, %28 : vector<8x256xf32>
    %c40 = arith.constant 40 : index
    %c0_15 = arith.constant 0 : index
    %30 = vector.load %arg9[%c40, %c0_15] : memref<216x256xf32, #tpu.memory_space<vmem>>, vector<8x256xf32>
    tpu.vector_store %arg9[%c40, %c0_15], %29 {strides = array<i32>} : memref<216x256xf32, #tpu.memory_space<vmem>>, vector<8x256xf32>,
    %c241_i32 = arith.constant 241 : i32
    %31 = tpu.dynamic_rotate %1 by %c241_i32 dim 1 : vector<8x256xf32>, i32 -> vector<8x256xf32>
    %c6 = arith.constant 6 : index
    %c0_16 = arith.constant 0 : index
    %32 = vector.load %arg2[%c6, %c0_16] : memref<27x256xf32, #tpu.memory_space<vmem>>, vector<1x256xf32>
    %33 = vector.broadcast %32 : vector<1x256xf32> to vector<8x256xf32>
    %34 = arith.mulf %31, %33 : vector<8x256xf32>
    %c48 = arith.constant 48 : index
    %c0_17 = arith.constant 0 : index
    %35 = vector.load %arg9[%c48, %c0_17] : memref<216x256xf32, #tpu.memory_space<vmem>>, vector<8x256xf32>
    tpu.vector_store %arg9[%c48, %c0_17], %34 {strides = array<i32>} : memref<216x256xf32, #tpu.memory_space<vmem>>, vector<8x256xf32>,
    %c240_i32 = arith.constant 240 : i32
    %36 = tpu.dynamic_rotate %1 by %c240_i32 dim 1 : vector<8x256xf32>, i32 -> vector<8x256xf32>
    %c7 = arith.constant 7 : index
    %c0_18 = arith.constant 0 : index
    %37 = vector.load %arg2[%c7, %c0_18] : memref<27x256xf32, #tpu.memory_space<vmem>>, vector<1x256xf32>
    %38 = vector.broadcast %37 : vector<1x256xf32> to vector<8x256xf32>
    %39 = arith.mulf %36, %38 : vector<8x256xf32>
    %c56 = arith.constant 56 : index
    %c0_19 = arith.constant 0 : index
    %40 = vector.load %arg9[%c56, %c0_19] : memref<216x256xf32, #tpu.memory_space<vmem>>, vector<8x256xf32>
    tpu.vector_store %arg9[%c56, %c0_19], %39 {strides = array<i32>} : memref<216x256xf32, #tpu.memory_space<vmem>>, vector<8x256xf32>,
    %c239_i32 = arith.constant 239 : i32
    %41 = tpu.dynamic_rotate %1 by %c239_i32 dim 1 : vector<8x256xf32>, i32 -> vector<8x256xf32>
    %c8_20 = arith.constant 8 : index
    %c0_21 = arith.constant 0 : index
    %42 = vector.load %arg2[%c8_20, %c0_21] : memref<27x256xf32, #tpu.memory_space<vmem>>, vector<1x256xf32>
    %43 = vector.broadcast %42 : vector<1x256xf32> to vector<8x256xf32>
    %44 = arith.mulf %41, %43 : vector<8x256xf32>
    %c64 = arith.constant 64 : index
    %c0_22 = arith.constant 0 : index
    %45 = vector.load %arg9[%c64, %c0_22] : memref<216x256xf32, #tpu.memory_space<vmem>>, vector<8x256xf32>
    tpu.vector_store %arg9[%c64, %c0_22], %44 {strides = array<i32>} : memref<216x256xf32, #tpu.memory_space<vmem>>, vector<8x256xf32>,
    %c0_23 = arith.constant 0 : index
    %c0_24 = arith.constant 0 : index
    %c0_25 = arith.constant 0 : index
    %46 = vector.load %arg3[%c0_23, %c0_24, %c0_25] : memref<3x8x72xf32, #tpu.memory_space<vmem>>, vector<1x8x72xf32>
    %47 = vector.shape_cast %46 : vector<1x8x72xf32> to vector<8x72xf32>
    %c0_26 = arith.constant 0 : index
    %c0_27 = arith.constant 0 : index
    %48 = vector.load %arg9[%c0_26, %c0_27] : memref<216x256xf32, #tpu.memory_space<vmem>>, vector<72x256xf32>
    %cst = arith.constant dense<0.000000e+00> : vector<8x256xf32>
    %49 = tpu.matmul %47, %48, %cst {dimension_numbers = #tpu.dot_dimension_numbers<[1], [0], [0], [1], [0, 0, 1, 1], [], []>} : vector<8x72xf32>, vector<72x256xf32>, vector<8x256xf32> -> vector<8x256xf32>
    %c0_28 = arith.constant 0 : index
    %c0_29 = arith.constant 0 : index
    %50 = vector.load %arg4[%c0_28, %c0_29] : memref<24x1xf32, #tpu.memory_space<vmem>>, vector<8x1xf32>
    %51 = vector.broadcast %50 : vector<8x1xf32> to vector<8x256xf32>
    %52 = arith.addf %49, %51 : vector<8x256xf32>
    %cst_30 = arith.constant 0.000000e+00 : f32
    %53 = vector.broadcast %cst_30 : f32 to vector<8x256xf32>
    %54 = arith.maximumf %52, %53 : vector<8x256xf32>
    %c0_31 = arith.constant 0 : index
    %c0_32 = arith.constant 0 : index
    %55 = vector.load %arg10[%c0_31, %c0_32] : memref<24x256xf32, #tpu.memory_space<vmem>>, vector<8x256xf32>
    tpu.vector_store %arg10[%c0_31, %c0_32], %54 {strides = array<i32>} : memref<24x256xf32, #tpu.memory_space<vmem>>, vector<8x256xf32>,
    %c0_33 = arith.constant 0 : index
    %c0_34 = arith.constant 0 : index
    %c0_35 = arith.constant 0 : index
    %56 = vector.load %arg1[%c0_33, %c0_34, %c0_35] : memref<1x8x256xf32, #tpu.memory_space<vmem>>, vector<1x8x256xf32>
    %57 = vector.shape_cast %56 : vector<1x8x256xf32> to vector<8x256xf32>
    %c34_i32 = arith.constant 34 : i32
    %58 = tpu.dynamic_rotate %57 by %c34_i32 dim 1 : vector<8x256xf32>, i32 -> vector<8x256xf32>
    %c9 = arith.constant 9 : index
    %c0_36 = arith.constant 0 : index
    %59 = vector.load %arg2[%c9, %c0_36] : memref<27x256xf32, #tpu.memory_space<vmem>>, vector<1x256xf32>
    %60 = vector.broadcast %59 : vector<1x256xf32> to vector<8x256xf32>
    %61 = arith.mulf %58, %60 : vector<8x256xf32>
    %c0_37 = arith.constant 0 : index
    %c0_38 = arith.constant 0 : index
    %62 = vector.load %arg9[%c0_37, %c0_38] : memref<216x256xf32, #tpu.memory_space<vmem>>, vector<8x256xf32>
    tpu.vector_store %arg9[%c0_37, %c0_38], %61 {strides = array<i32>} : memref<216x256xf32, #tpu.memory_space<vmem>>, vector<8x256xf32>,
    %c32_i32 = arith.constant 32 : i32
    %63 = tpu.dynamic_rotate %57 by %c32_i32 dim 1 : vector<8x256xf32>, i32 -> vector<8x256xf32>
    %c10 = arith.constant 10 : index
    %c0_39 = arith.constant 0 : index
    %64 = vector.load %arg2[%c10, %c0_39] : memref<27x256xf32, #tpu.memory_space<vmem>>, vector<1x256xf32>
    %65 = vector.broadcast %64 : vector<1x256xf32> to vector<8x256xf32>
    %66 = arith.mulf %63, %65 : vector<8x256xf32>
    %c8_40 = arith.constant 8 : index
    %c0_41 = arith.constant 0 : index
    %67 = vector.load %arg9[%c8_40, %c0_41] : memref<216x256xf32, #tpu.memory_space<vmem>>, vector<8x256xf32>
    tpu.vector_store %arg9[%c8_40, %c0_41], %66 {strides = array<i32>} : memref<216x256xf32, #tpu.memory_space<vmem>>, vector<8x256xf32>,
    %c30_i32 = arith.constant 30 : i32
    %68 = tpu.dynamic_rotate %57 by %c30_i32 dim 1 : vector<8x256xf32>, i32 -> vector<8x256xf32>
    %c11 = arith.constant 11 : index
    %c0_42 = arith.constant 0 : index
    %69 = vector.load %arg2[%c11, %c0_42] : memref<27x256xf32, #tpu.memory_space<vmem>>, vector<1x256xf32>
    %70 = vector.broadcast %69 : vector<1x256xf32> to vector<8x256xf32>
    %71 = arith.mulf %68, %70 : vector<8x256xf32>
    %c16_43 = arith.constant 16 : index
    %c0_44 = arith.constant 0 : index
    %72 = vector.load %arg9[%c16_43, %c0_44] : memref<216x256xf32, #tpu.memory_space<vmem>>, vector<8x256xf32>
    tpu.vector_store %arg9[%c16_43, %c0_44], %71 {strides = array<i32>} : memref<216x256xf32, #tpu.memory_space<vmem>>, vector<8x256xf32>,
    %c2_i32 = arith.constant 2 : i32
    %73 = tpu.dynamic_rotate %57 by %c2_i32 dim 1 : vector<8x256xf32>, i32 -> vector<8x256xf32>
    %c12 = arith.constant 12 : index
    %c0_45 = arith.constant 0 : index
    %74 = vector.load %arg2[%c12, %c0_45] : memref<27x256xf32, #tpu.memory_space<vmem>>, vector<1x256xf32>
    %75 = vector.broadcast %74 : vector<1x256xf32> to vector<8x256xf32>
    %76 = arith.mulf %73, %75 : vector<8x256xf32>
    %c24_46 = arith.constant 24 : index
    %c0_47 = arith.constant 0 : index
    %77 = vector.load %arg9[%c24_46, %c0_47] : memref<216x256xf32, #tpu.memory_space<vmem>>, vector<8x256xf32>
    tpu.vector_store %arg9[%c24_46, %c0_47], %76 {strides = array<i32>} : memref<216x256xf32, #tpu.memory_space<vmem>>, vector<8x256xf32>,
    %c13 = arith.constant 13 : index
    %c0_48 = arith.constant 0 : index
    %78 = vector.load %arg2[%c13, %c0_48] : memref<27x256xf32, #tpu.memory_space<vmem>>, vector<1x256xf32>
    %79 = vector.broadcast %78 : vector<1x256xf32> to vector<8x256xf32>
    %80 = arith.mulf %57, %79 : vector<8x256xf32>
    %c32_49 = arith.constant 32 : index
    %c0_50 = arith.constant 0 : index
    %81 = vector.load %arg9[%c32_49, %c0_50] : memref<216x256xf32, #tpu.memory_space<vmem>>, vector<8x256xf32>
    tpu.vector_store %arg9[%c32_49, %c0_50], %80 {strides = array<i32>} : memref<216x256xf32, #tpu.memory_space<vmem>>, vector<8x256xf32>,
    %c254_i32 = arith.constant 254 : i32
    %82 = tpu.dynamic_rotate %57 by %c254_i32 dim 1 : vector<8x256xf32>, i32 -> vector<8x256xf32>
    %c14 = arith.constant 14 : index
    %c0_51 = arith.constant 0 : index
    %83 = vector.load %arg2[%c14, %c0_51] : memref<27x256xf32, #tpu.memory_space<vmem>>, vector<1x256xf32>
    %84 = vector.broadcast %83 : vector<1x256xf32> to vector<8x256xf32>
    %85 = arith.mulf %82, %84 : vector<8x256xf32>
    %c40_52 = arith.constant 40 : index
    %c0_53 = arith.constant 0 : index
    %86 = vector.load %arg9[%c40_52, %c0_53] : memref<216x256xf32, #tpu.memory_space<vmem>>, vector<8x256xf32>
    tpu.vector_store %arg9[%c40_52, %c0_53], %85 {strides = array<i32>} : memref<216x256xf32, #tpu.memory_space<vmem>>, vector<8x256xf32>,
    %c226_i32 = arith.constant 226 : i32
    %87 = tpu.dynamic_rotate %57 by %c226_i32 dim 1 : vector<8x256xf32>, i32 -> vector<8x256xf32>
    %c15 = arith.constant 15 : index
    %c0_54 = arith.constant 0 : index
    %88 = vector.load %arg2[%c15, %c0_54] : memref<27x256xf32, #tpu.memory_space<vmem>>, vector<1x256xf32>
    %89 = vector.broadcast %88 : vector<1x256xf32> to vector<8x256xf32>
    %90 = arith.mulf %87, %89 : vector<8x256xf32>
    %c48_55 = arith.constant 48 : index
    %c0_56 = arith.constant 0 : index
    %91 = vector.load %arg9[%c48_55, %c0_56] : memref<216x256xf32, #tpu.memory_space<vmem>>, vector<8x256xf32>
    tpu.vector_store %arg9[%c48_55, %c0_56], %90 {strides = array<i32>} : memref<216x256xf32, #tpu.memory_space<vmem>>, vector<8x256xf32>,
    %c224_i32 = arith.constant 224 : i32
    %92 = tpu.dynamic_rotate %57 by %c224_i32 dim 1 : vector<8x256xf32>, i32 -> vector<8x256xf32>
    %c16_57 = arith.constant 16 : index
    %c0_58 = arith.constant 0 : index
    %93 = vector.load %arg2[%c16_57, %c0_58] : memref<27x256xf32, #tpu.memory_space<vmem>>, vector<1x256xf32>
    %94 = vector.broadcast %93 : vector<1x256xf32> to vector<8x256xf32>
    %95 = arith.mulf %92, %94 : vector<8x256xf32>
    %c56_59 = arith.constant 56 : index
    %c0_60 = arith.constant 0 : index
    %96 = vector.load %arg9[%c56_59, %c0_60] : memref<216x256xf32, #tpu.memory_space<vmem>>, vector<8x256xf32>
    tpu.vector_store %arg9[%c56_59, %c0_60], %95 {strides = array<i32>} : memref<216x256xf32, #tpu.memory_space<vmem>>, vector<8x256xf32>,
    %c222_i32 = arith.constant 222 : i32
    %97 = tpu.dynamic_rotate %57 by %c222_i32 dim 1 : vector<8x256xf32>, i32 -> vector<8x256xf32>
    %c17 = arith.constant 17 : index
    %c0_61 = arith.constant 0 : index
    %98 = vector.load %arg2[%c17, %c0_61] : memref<27x256xf32, #tpu.memory_space<vmem>>, vector<1x256xf32>
    %99 = vector.broadcast %98 : vector<1x256xf32> to vector<8x256xf32>
    %100 = arith.mulf %97, %99 : vector<8x256xf32>
    %c64_62 = arith.constant 64 : index
    %c0_63 = arith.constant 0 : index
    %101 = vector.load %arg9[%c64_62, %c0_63] : memref<216x256xf32, #tpu.memory_space<vmem>>, vector<8x256xf32>
    tpu.vector_store %arg9[%c64_62, %c0_63], %100 {strides = array<i32>} : memref<216x256xf32, #tpu.memory_space<vmem>>, vector<8x256xf32>,
    %c1_64 = arith.constant 1 : index
    %c0_65 = arith.constant 0 : index
    %c0_66 = arith.constant 0 : index
    %102 = vector.load %arg3[%c1_64, %c0_65, %c0_66] : memref<3x8x72xf32, #tpu.memory_space<vmem>>, vector<1x8x72xf32>
    %103 = vector.shape_cast %102 : vector<1x8x72xf32> to vector<8x72xf32>
    %c0_67 = arith.constant 0 : index
    %c0_68 = arith.constant 0 : index
    %104 = vector.load %arg9[%c0_67, %c0_68] : memref<216x256xf32, #tpu.memory_space<vmem>>, vector<72x256xf32>
    %cst_69 = arith.constant dense<0.000000e+00> : vector<8x256xf32>
    %105 = tpu.matmul %103, %104, %cst_69 {dimension_numbers = #tpu.dot_dimension_numbers<[1], [0], [0], [1], [0, 0, 1, 1], [], []>} : vector<8x72xf32>, vector<72x256xf32>, vector<8x256xf32> -> vector<8x256xf32>
    %c8_70 = arith.constant 8 : index
    %c0_71 = arith.constant 0 : index
    %106 = vector.load %arg4[%c8_70, %c0_71] : memref<24x1xf32, #tpu.memory_space<vmem>>, vector<8x1xf32>
    %107 = vector.broadcast %106 : vector<8x1xf32> to vector<8x256xf32>
    %108 = arith.addf %105, %107 : vector<8x256xf32>
    %cst_72 = arith.constant 0.000000e+00 : f32
    %109 = vector.broadcast %cst_72 : f32 to vector<8x256xf32>
    %110 = arith.maximumf %108, %109 : vector<8x256xf32>
    %c8_73 = arith.constant 8 : index
    %c0_74 = arith.constant 0 : index
    %111 = vector.load %arg10[%c8_73, %c0_74] : memref<24x256xf32, #tpu.memory_space<vmem>>, vector<8x256xf32>
    tpu.vector_store %arg10[%c8_73, %c0_74], %110 {strides = array<i32>} : memref<24x256xf32, #tpu.memory_space<vmem>>, vector<8x256xf32>,
    %c0_75 = arith.constant 0 : index
    %c0_76 = arith.constant 0 : index
    %c0_77 = arith.constant 0 : index
    %112 = vector.load %arg1[%c0_75, %c0_76, %c0_77] : memref<1x8x256xf32, #tpu.memory_space<vmem>>, vector<1x8x256xf32>
    %113 = vector.shape_cast %112 : vector<1x8x256xf32> to vector<8x256xf32>
    %c51_i32 = arith.constant 51 : i32
    %114 = tpu.dynamic_rotate %113 by %c51_i32 dim 1 : vector<8x256xf32>, i32 -> vector<8x256xf32>
    %c18 = arith.constant 18 : index
    %c0_78 = arith.constant 0 : index
    %115 = vector.load %arg2[%c18, %c0_78] : memref<27x256xf32, #tpu.memory_space<vmem>>, vector<1x256xf32>
    %116 = vector.broadcast %115 : vector<1x256xf32> to vector<8x256xf32>
    %117 = arith.mulf %114, %116 : vector<8x256xf32>
    %c0_79 = arith.constant 0 : index
    %c0_80 = arith.constant 0 : index
    %118 = vector.load %arg9[%c0_79, %c0_80] : memref<216x256xf32, #tpu.memory_space<vmem>>, vector<8x256xf32>
    tpu.vector_store %arg9[%c0_79, %c0_80], %117 {strides = array<i32>} : memref<216x256xf32, #tpu.memory_space<vmem>>, vector<8x256xf32>,
    %c48_i32 = arith.constant 48 : i32
    %119 = tpu.dynamic_rotate %113 by %c48_i32 dim 1 : vector<8x256xf32>, i32 -> vector<8x256xf32>
    %c19 = arith.constant 19 : index
    %c0_81 = arith.constant 0 : index
    %120 = vector.load %arg2[%c19, %c0_81] : memref<27x256xf32, #tpu.memory_space<vmem>>, vector<1x256xf32>
    %121 = vector.broadcast %120 : vector<1x256xf32> to vector<8x256xf32>
    %122 = arith.mulf %119, %121 : vector<8x256xf32>
    %c8_82 = arith.constant 8 : index
    %c0_83 = arith.constant 0 : index
    %123 = vector.load %arg9[%c8_82, %c0_83] : memref<216x256xf32, #tpu.memory_space<vmem>>, vector<8x256xf32>
    tpu.vector_store %arg9[%c8_82, %c0_83], %122 {strides = array<i32>} : memref<216x256xf32, #tpu.memory_space<vmem>>, vector<8x256xf32>,
    %c45_i32 = arith.constant 45 : i32
    %124 = tpu.dynamic_rotate %113 by %c45_i32 dim 1 : vector<8x256xf32>, i32 -> vector<8x256xf32>
    %c20 = arith.constant 20 : index
    %c0_84 = arith.constant 0 : index
    %125 = vector.load %arg2[%c20, %c0_84] : memref<27x256xf32, #tpu.memory_space<vmem>>, vector<1x256xf32>
    %126 = vector.broadcast %125 : vector<1x256xf32> to vector<8x256xf32>
    %127 = arith.mulf %124, %126 : vector<8x256xf32>
    %c16_85 = arith.constant 16 : index
    %c0_86 = arith.constant 0 : index
    %128 = vector.load %arg9[%c16_85, %c0_86] : memref<216x256xf32, #tpu.memory_space<vmem>>, vector<8x256xf32>
    tpu.vector_store %arg9[%c16_85, %c0_86], %127 {strides = array<i32>} : memref<216x256xf32, #tpu.memory_space<vmem>>, vector<8x256xf32>,
    %c3_i32 = arith.constant 3 : i32
    %129 = tpu.dynamic_rotate %113 by %c3_i32 dim 1 : vector<8x256xf32>, i32 -> vector<8x256xf32>
    %c21 = arith.constant 21 : index
    %c0_87 = arith.constant 0 : index
    %130 = vector.load %arg2[%c21, %c0_87] : memref<27x256xf32, #tpu.memory_space<vmem>>, vector<1x256xf32>
    %131 = vector.broadcast %130 : vector<1x256xf32> to vector<8x256xf32>
    %132 = arith.mulf %129, %131 : vector<8x256xf32>
    %c24_88 = arith.constant 24 : index
    %c0_89 = arith.constant 0 : index
    %133 = vector.load %arg9[%c24_88, %c0_89] : memref<216x256xf32, #tpu.memory_space<vmem>>, vector<8x256xf32>
    tpu.vector_store %arg9[%c24_88, %c0_89], %132 {strides = array<i32>} : memref<216x256xf32, #tpu.memory_space<vmem>>, vector<8x256xf32>,
    %c22 = arith.constant 22 : index
    %c0_90 = arith.constant 0 : index
    %134 = vector.load %arg2[%c22, %c0_90] : memref<27x256xf32, #tpu.memory_space<vmem>>, vector<1x256xf32>
    %135 = vector.broadcast %134 : vector<1x256xf32> to vector<8x256xf32>
    %136 = arith.mulf %113, %135 : vector<8x256xf32>
    %c32_91 = arith.constant 32 : index
    %c0_92 = arith.constant 0 : index
    %137 = vector.load %arg9[%c32_91, %c0_92] : memref<216x256xf32, #tpu.memory_space<vmem>>, vector<8x256xf32>
    tpu.vector_store %arg9[%c32_91, %c0_92], %136 {strides = array<i32>} : memref<216x256xf32, #tpu.memory_space<vmem>>, vector<8x256xf32>,
    %c253_i32 = arith.constant 253 : i32
    %138 = tpu.dynamic_rotate %113 by %c253_i32 dim 1 : vector<8x256xf32>, i32 -> vector<8x256xf32>
    %c23 = arith.constant 23 : index
    %c0_93 = arith.constant 0 : index
    %139 = vector.load %arg2[%c23, %c0_93] : memref<27x256xf32, #tpu.memory_space<vmem>>, vector<1x256xf32>
    %140 = vector.broadcast %139 : vector<1x256xf32> to vector<8x256xf32>
    %141 = arith.mulf %138, %140 : vector<8x256xf32>
    %c40_94 = arith.constant 40 : index
    %c0_95 = arith.constant 0 : index
    %142 = vector.load %arg9[%c40_94, %c0_95] : memref<216x256xf32, #tpu.memory_space<vmem>>, vector<8x256xf32>
    tpu.vector_store %arg9[%c40_94, %c0_95], %141 {strides = array<i32>} : memref<216x256xf32, #tpu.memory_space<vmem>>, vector<8x256xf32>,
    %c211_i32 = arith.constant 211 : i32
    %143 = tpu.dynamic_rotate %113 by %c211_i32 dim 1 : vector<8x256xf32>, i32 -> vector<8x256xf32>
    %c24_96 = arith.constant 24 : index
    %c0_97 = arith.constant 0 : index
    %144 = vector.load %arg2[%c24_96, %c0_97] : memref<27x256xf32, #tpu.memory_space<vmem>>, vector<1x256xf32>
    %145 = vector.broadcast %144 : vector<1x256xf32> to vector<8x256xf32>
    %146 = arith.mulf %143, %145 : vector<8x256xf32>
    %c48_98 = arith.constant 48 : index
    %c0_99 = arith.constant 0 : index
    %147 = vector.load %arg9[%c48_98, %c0_99] : memref<216x256xf32, #tpu.memory_space<vmem>>, vector<8x256xf32>
    tpu.vector_store %arg9[%c48_98, %c0_99], %146 {strides = array<i32>} : memref<216x256xf32, #tpu.memory_space<vmem>>, vector<8x256xf32>,
    %c208_i32 = arith.constant 208 : i32
    %148 = tpu.dynamic_rotate %113 by %c208_i32 dim 1 : vector<8x256xf32>, i32 -> vector<8x256xf32>
    %c25 = arith.constant 25 : index
    %c0_100 = arith.constant 0 : index
    %149 = vector.load %arg2[%c25, %c0_100] : memref<27x256xf32, #tpu.memory_space<vmem>>, vector<1x256xf32>
    %150 = vector.broadcast %149 : vector<1x256xf32> to vector<8x256xf32>
    %151 = arith.mulf %148, %150 : vector<8x256xf32>
    %c56_101 = arith.constant 56 : index
    %c0_102 = arith.constant 0 : index
    %152 = vector.load %arg9[%c56_101, %c0_102] : memref<216x256xf32, #tpu.memory_space<vmem>>, vector<8x256xf32>
    tpu.vector_store %arg9[%c56_101, %c0_102], %151 {strides = array<i32>} : memref<216x256xf32, #tpu.memory_space<vmem>>, vector<8x256xf32>,
    %c205_i32 = arith.constant 205 : i32
    %153 = tpu.dynamic_rotate %113 by %c205_i32 dim 1 : vector<8x256xf32>, i32 -> vector<8x256xf32>
    %c26 = arith.constant 26 : index
    %c0_103 = arith.constant 0 : index
    %154 = vector.load %arg2[%c26, %c0_103] : memref<27x256xf32, #tpu.memory_space<vmem>>, vector<1x256xf32>
    %155 = vector.broadcast %154 : vector<1x256xf32> to vector<8x256xf32>
    %156 = arith.mulf %153, %155 : vector<8x256xf32>
    %c64_104 = arith.constant 64 : index
    %c0_105 = arith.constant 0 : index
    %157 = vector.load %arg9[%c64_104, %c0_105] : memref<216x256xf32, #tpu.memory_space<vmem>>, vector<8x256xf32>
    tpu.vector_store %arg9[%c64_104, %c0_105], %156 {strides = array<i32>} : memref<216x256xf32, #tpu.memory_space<vmem>>, vector<8x256xf32>,
    %c2_106 = arith.constant 2 : index
    %c0_107 = arith.constant 0 : index
    %c0_108 = arith.constant 0 : index
    %158 = vector.load %arg3[%c2_106, %c0_107, %c0_108] : memref<3x8x72xf32, #tpu.memory_space<vmem>>, vector<1x8x72xf32>
    %159 = vector.shape_cast %158 : vector<1x8x72xf32> to vector<8x72xf32>
    %c0_109 = arith.constant 0 : index
    %c0_110 = arith.constant 0 : index
    %160 = vector.load %arg9[%c0_109, %c0_110] : memref<216x256xf32, #tpu.memory_space<vmem>>, vector<72x256xf32>
    %cst_111 = arith.constant dense<0.000000e+00> : vector<8x256xf32>
    %161 = tpu.matmul %159, %160, %cst_111 {dimension_numbers = #tpu.dot_dimension_numbers<[1], [0], [0], [1], [0, 0, 1, 1], [], []>} : vector<8x72xf32>, vector<72x256xf32>, vector<8x256xf32> -> vector<8x256xf32>
    %c16_112 = arith.constant 16 : index
    %c0_113 = arith.constant 0 : index
    %162 = vector.load %arg4[%c16_112, %c0_113] : memref<24x1xf32, #tpu.memory_space<vmem>>, vector<8x1xf32>
    %163 = vector.broadcast %162 : vector<8x1xf32> to vector<8x256xf32>
    %164 = arith.addf %161, %163 : vector<8x256xf32>
    %cst_114 = arith.constant 0.000000e+00 : f32
    %165 = vector.broadcast %cst_114 : f32 to vector<8x256xf32>
    %166 = arith.maximumf %164, %165 : vector<8x256xf32>
    %c16_115 = arith.constant 16 : index
    %c0_116 = arith.constant 0 : index
    %167 = vector.load %arg10[%c16_115, %c0_116] : memref<24x256xf32, #tpu.memory_space<vmem>>, vector<8x256xf32>
    tpu.vector_store %arg10[%c16_115, %c0_116], %166 {strides = array<i32>} : memref<24x256xf32, #tpu.memory_space<vmem>>, vector<8x256xf32>,
    %c0_117 = arith.constant 0 : index
    %c0_118 = arith.constant 0 : index
    %168 = vector.load %arg10[%c0_117, %c0_118] : memref<24x256xf32, #tpu.memory_space<vmem>>, vector<24x256xf32>
    %c17_i32_119 = arith.constant 17 : i32
    %169 = tpu.dynamic_rotate %168 by %c17_i32_119 dim 1 : vector<24x256xf32>, i32 -> vector<24x256xf32>
    %c0_120 = arith.constant 0 : index
    %c0_121 = arith.constant 0 : index
    %170 = vector.load %arg2[%c0_120, %c0_121] : memref<27x256xf32, #tpu.memory_space<vmem>>, vector<1x256xf32>
    %171 = vector.broadcast %170 : vector<1x256xf32> to vector<24x256xf32>
    %172 = arith.mulf %169, %171 : vector<24x256xf32>
    %c0_122 = arith.constant 0 : index
    %c0_123 = arith.constant 0 : index
    %173 = vector.load %arg9[%c0_122, %c0_123] : memref<216x256xf32, #tpu.memory_space<vmem>>, vector<24x256xf32>
    tpu.vector_store %arg9[%c0_122, %c0_123], %172 {strides = array<i32>} : memref<216x256xf32, #tpu.memory_space<vmem>>, vector<24x256xf32>,
    %c16_i32_124 = arith.constant 16 : i32
    %174 = tpu.dynamic_rotate %168 by %c16_i32_124 dim 1 : vector<24x256xf32>, i32 -> vector<24x256xf32>
    %c1_125 = arith.constant 1 : index
    %c0_126 = arith.constant 0 : index
    %175 = vector.load %arg2[%c1_125, %c0_126] : memref<27x256xf32, #tpu.memory_space<vmem>>, vector<1x256xf32>
    %176 = vector.broadcast %175 : vector<1x256xf32> to vector<24x256xf32>
    %177 = arith.mulf %174, %176 : vector<24x256xf32>
    %c24_127 = arith.constant 24 : index
    %c0_128 = arith.constant 0 : index
    %178 = vector.load %arg9[%c24_127, %c0_128] : memref<216x256xf32, #tpu.memory_space<vmem>>, vector<24x256xf32>
    tpu.vector_store %arg9[%c24_127, %c0_128], %177 {strides = array<i32>} : memref<216x256xf32, #tpu.memory_space<vmem>>, vector<24x256xf32>,
    %c15_i32_129 = arith.constant 15 : i32
    %179 = tpu.dynamic_rotate %168 by %c15_i32_129 dim 1 : vector<24x256xf32>, i32 -> vector<24x256xf32>
    %c2_130 = arith.constant 2 : index
    %c0_131 = arith.constant 0 : index
    %180 = vector.load %arg2[%c2_130, %c0_131] : memref<27x256xf32, #tpu.memory_space<vmem>>, vector<1x256xf32>
    %181 = vector.broadcast %180 : vector<1x256xf32> to vector<24x256xf32>
    %182 = arith.mulf %179, %181 : vector<24x256xf32>
    %c48_132 = arith.constant 48 : index
    %c0_133 = arith.constant 0 : index
    %183 = vector.load %arg9[%c48_132, %c0_133] : memref<216x256xf32, #tpu.memory_space<vmem>>, vector<24x256xf32>
    tpu.vector_store %arg9[%c48_132, %c0_133], %182 {strides = array<i32>} : memref<216x256xf32, #tpu.memory_space<vmem>>, vector<24x256xf32>,
    %c1_i32_134 = arith.constant 1 : i32
    %184 = tpu.dynamic_rotate %168 by %c1_i32_134 dim 1 : vector<24x256xf32>, i32 -> vector<24x256xf32>
    %c3_135 = arith.constant 3 : index
    %c0_136 = arith.constant 0 : index
    %185 = vector.load %arg2[%c3_135, %c0_136] : memref<27x256xf32, #tpu.memory_space<vmem>>, vector<1x256xf32>
    %186 = vector.broadcast %185 : vector<1x256xf32> to vector<24x256xf32>
    %187 = arith.mulf %184, %186 : vector<24x256xf32>
    %c72 = arith.constant 72 : index
    %c0_137 = arith.constant 0 : index
    %188 = vector.load %arg9[%c72, %c0_137] : memref<216x256xf32, #tpu.memory_space<vmem>>, vector<24x256xf32>
    tpu.vector_store %arg9[%c72, %c0_137], %187 {strides = array<i32>} : memref<216x256xf32, #tpu.memory_space<vmem>>, vector<24x256xf32>,
    %c4_138 = arith.constant 4 : index
    %c0_139 = arith.constant 0 : index
    %189 = vector.load %arg2[%c4_138, %c0_139] : memref<27x256xf32, #tpu.memory_space<vmem>>, vector<1x256xf32>
    %190 = vector.broadcast %189 : vector<1x256xf32> to vector<24x256xf32>
    %191 = arith.mulf %168, %190 : vector<24x256xf32>
    %c96 = arith.constant 96 : index
    %c0_140 = arith.constant 0 : index
    %192 = vector.load %arg9[%c96, %c0_140] : memref<216x256xf32, #tpu.memory_space<vmem>>, vector<24x256xf32>
    tpu.vector_store %arg9[%c96, %c0_140], %191 {strides = array<i32>} : memref<216x256xf32, #tpu.memory_space<vmem>>, vector<24x256xf32>,
    %c255_i32_141 = arith.constant 255 : i32
    %193 = tpu.dynamic_rotate %168 by %c255_i32_141 dim 1 : vector<24x256xf32>, i32 -> vector<24x256xf32>
    %c5_142 = arith.constant 5 : index
    %c0_143 = arith.constant 0 : index
    %194 = vector.load %arg2[%c5_142, %c0_143] : memref<27x256xf32, #tpu.memory_space<vmem>>, vector<1x256xf32>
    %195 = vector.broadcast %194 : vector<1x256xf32> to vector<24x256xf32>
    %196 = arith.mulf %193, %195 : vector<24x256xf32>
    %c120 = arith.constant 120 : index
    %c0_144 = arith.constant 0 : index
    %197 = vector.load %arg9[%c120, %c0_144] : memref<216x256xf32, #tpu.memory_space<vmem>>, vector<24x256xf32>
    tpu.vector_store %arg9[%c120, %c0_144], %196 {strides = array<i32>} : memref<216x256xf32, #tpu.memory_space<vmem>>, vector<24x256xf32>,
    %c241_i32_145 = arith.constant 241 : i32
    %198 = tpu.dynamic_rotate %168 by %c241_i32_145 dim 1 : vector<24x256xf32>, i32 -> vector<24x256xf32>
    %c6_146 = arith.constant 6 : index
    %c0_147 = arith.constant 0 : index
    %199 = vector.load %arg2[%c6_146, %c0_147] : memref<27x256xf32, #tpu.memory_space<vmem>>, vector<1x256xf32>
    %200 = vector.broadcast %199 : vector<1x256xf32> to vector<24x256xf32>
    %201 = arith.mulf %198, %200 : vector<24x256xf32>
    %c144 = arith.constant 144 : index
    %c0_148 = arith.constant 0 : index
    %202 = vector.load %arg9[%c144, %c0_148] : memref<216x256xf32, #tpu.memory_space<vmem>>, vector<24x256xf32>
    tpu.vector_store %arg9[%c144, %c0_148], %201 {strides = array<i32>} : memref<216x256xf32, #tpu.memory_space<vmem>>, vector<24x256xf32>,
    %c240_i32_149 = arith.constant 240 : i32
    %203 = tpu.dynamic_rotate %168 by %c240_i32_149 dim 1 : vector<24x256xf32>, i32 -> vector<24x256xf32>
    %c7_150 = arith.constant 7 : index
    %c0_151 = arith.constant 0 : index
    %204 = vector.load %arg2[%c7_150, %c0_151] : memref<27x256xf32, #tpu.memory_space<vmem>>, vector<1x256xf32>
    %205 = vector.broadcast %204 : vector<1x256xf32> to vector<24x256xf32>
    %206 = arith.mulf %203, %205 : vector<24x256xf32>
    %c168 = arith.constant 168 : index
    %c0_152 = arith.constant 0 : index
    %207 = vector.load %arg9[%c168, %c0_152] : memref<216x256xf32, #tpu.memory_space<vmem>>, vector<24x256xf32>
    tpu.vector_store %arg9[%c168, %c0_152], %206 {strides = array<i32>} : memref<216x256xf32, #tpu.memory_space<vmem>>, vector<24x256xf32>,
    %c239_i32_153 = arith.constant 239 : i32
    %208 = tpu.dynamic_rotate %168 by %c239_i32_153 dim 1 : vector<24x256xf32>, i32 -> vector<24x256xf32>
    %c8_154 = arith.constant 8 : index
    %c0_155 = arith.constant 0 : index
    %209 = vector.load %arg2[%c8_154, %c0_155] : memref<27x256xf32, #tpu.memory_space<vmem>>, vector<1x256xf32>
    %210 = vector.broadcast %209 : vector<1x256xf32> to vector<24x256xf32>
    %211 = arith.mulf %208, %210 : vector<24x256xf32>
    %c192 = arith.constant 192 : index
    %c0_156 = arith.constant 0 : index
    %212 = vector.load %arg9[%c192, %c0_156] : memref<216x256xf32, #tpu.memory_space<vmem>>, vector<24x256xf32>
    tpu.vector_store %arg9[%c192, %c0_156], %211 {strides = array<i32>} : memref<216x256xf32, #tpu.memory_space<vmem>>, vector<24x256xf32>,
    %c0_157 = arith.constant 0 : index
    %c0_158 = arith.constant 0 : index
    %213 = vector.load %arg5[%c0_157, %c0_158] : memref<8x216xf32, #tpu.memory_space<vmem>>, vector<8x216xf32>
    %c0_159 = arith.constant 0 : index
    %c0_160 = arith.constant 0 : index
    %214 = vector.load %arg9[%c0_159, %c0_160] : memref<216x256xf32, #tpu.memory_space<vmem>>, vector<216x256xf32>
    %cst_161 = arith.constant dense<0.000000e+00> : vector<8x256xf32>
    %215 = tpu.matmul %213, %214, %cst_161 {dimension_numbers = #tpu.dot_dimension_numbers<[1], [0], [0], [1], [0, 0, 1, 1], [], []>} : vector<8x216xf32>, vector<216x256xf32>, vector<8x256xf32> -> vector<8x256xf32>
    %c0_162 = arith.constant 0 : index
    %c0_163 = arith.constant 0 : index
    %c0_164 = arith.constant 0 : index
    %216 = vector.load %arg1[%c0_162, %c0_163, %c0_164] : memref<1x8x256xf32, #tpu.memory_space<vmem>>, vector<1x8x256xf32>
    %217 = vector.shape_cast %216 : vector<1x8x256xf32> to vector<8x256xf32>
    %c0_165 = arith.constant 0 : index
    %c0_166 = arith.constant 0 : index
    %218 = vector.load %arg6[%c0_165, %c0_166] : memref<8x1xf32, #tpu.memory_space<vmem>>, vector<8x1xf32>
    %219 = vector.broadcast %218 : vector<8x1xf32> to vector<8x256xf32>
    %220 = arith.mulf %217, %219 : vector<8x256xf32>
    %221 = arith.addf %215, %220 : vector<8x256xf32>
    %c0_167 = arith.constant 0 : index
    %c0_168 = arith.constant 0 : index
    %222 = vector.load %arg7[%c0_167, %c0_168] : memref<8x1xf32, #tpu.memory_space<vmem>>, vector<8x1xf32>
    %223 = vector.broadcast %222 : vector<8x1xf32> to vector<8x256xf32>
    %224 = arith.addf %221, %223 : vector<8x256xf32>
    %cst_169 = arith.constant 0.000000e+00 : f32
    %225 = vector.broadcast %cst_169 : f32 to vector<8x256xf32>
    %226 = arith.maximumf %224, %225 : vector<8x256xf32>
    %c0_170 = arith.constant 0 : index
    %c0_171 = arith.constant 0 : index
    %c0_172 = arith.constant 0 : index
    %227 = vector.load %arg8[%c0_170, %c0_171, %c0_172] : memref<1x8x256xf32, #tpu.memory_space<vmem>>, vector<1x8x256xf32>
    %228 = vector.shape_cast %227 : vector<1x8x256xf32> to vector<8x256xf32>
    %229 = vector.shape_cast %226 : vector<8x256xf32> to vector<1x8x256xf32>
    tpu.vector_store %arg8[%c0_170, %c0_171, %c0_172], %229 {strides = array<i32>} : memref<1x8x256xf32, #tpu.memory_space<vmem>>, vector<1x8x256xf32>,
    return
  }
  func.func @transform_0(%arg0: i32) -> (i32, i32, i32) {
    %c0_i32 = arith.constant 0 : i32
    %c0_i32_0 = arith.constant 0 : i32
    %c0_i32_1 = arith.constant 0 : i32
    return %arg0, %c0_i32, %c0_i32_0 : i32, i32, i32
  }
  func.func @transform_1(%arg0: i32) -> (i32, i32) {
    %c0_i32 = arith.constant 0 : i32
    %c0_i32_0 = arith.constant 0 : i32
    %c0_i32_1 = arith.constant 0 : i32
    return %c0_i32, %c0_i32_0 : i32, i32
  }
  func.func @transform_2(%arg0: i32) -> (i32, i32, i32) {
    %c0_i32 = arith.constant 0 : i32
    %c0_i32_0 = arith.constant 0 : i32
    %c0_i32_1 = arith.constant 0 : i32
    %c0_i32_2 = arith.constant 0 : i32
    return %c0_i32, %c0_i32_0, %c0_i32_1 : i32, i32, i32
  }
  func.func @transform_3(%arg0: i32) -> (i32, i32) {
    %c0_i32 = arith.constant 0 : i32
    %c0_i32_0 = arith.constant 0 : i32
    %c0_i32_1 = arith.constant 0 : i32
    return %c0_i32, %c0_i32_0 : i32, i32
  }
  func.func @transform_4(%arg0: i32) -> (i32, i32) {
    %c0_i32 = arith.constant 0 : i32
    %c0_i32_0 = arith.constant 0 : i32
    %c0_i32_1 = arith.constant 0 : i32
    return %c0_i32, %c0_i32_0 : i32, i32
  }
  func.func @transform_5(%arg0: i32) -> (i32, i32) {
    %c0_i32 = arith.constant 0 : i32
    %c0_i32_0 = arith.constant 0 : i32
    %c0_i32_1 = arith.constant 0 : i32
    return %c0_i32, %c0_i32_0 : i32, i32
  }
  func.func @transform_6(%arg0: i32) -> (i32, i32) {
    %c0_i32 = arith.constant 0 : i32
    %c0_i32_0 = arith.constant 0 : i32
    %c0_i32_1 = arith.constant 0 : i32
    return %c0_i32, %c0_i32_0 : i32, i32
  }
  func.func @transform_7(%arg0: i32) -> (i32, i32, i32) {
    %c0_i32 = arith.constant 0 : i32
    %c0_i32_0 = arith.constant 0 : i32
    %c0_i32_1 = arith.constant 0 : i32
    return %arg0, %c0_i32, %c0_i32_0 : i32, i32, i32
  }
}

</mosaic_0001>

<bundles_post_ra>
// kernel: dilated_block_pallas.1
= control target key start
LH: loop header
LB: loop body
LE: loop exit
PB: predicated region body
PF: predicated region fallthrough
CT: control target
= control target key end

     0   :  { %s2062_s24 = smov 0   ;;  %s2746_s0 = inlined_call_operand.vmem [shape: f32[2,8,256], index: 0, kind: input, shape index: {}]   ;;  %s2747_s1 = inlined_call_operand.vmem [shape: f32[27,256], index: 1, kind: input, shape index: {}]   ;;  %s2748_s2 = inlined_call_operand.vmem [shape: f32[3,8,72], index: 2, kind: input, shape index: {}]   ;;  %s2749_s3 = inlined_call_operand.vmem [shape: f32[24,1], index: 3, kind: input, shape index: {}]   ;;  %s2750_s4 = inlined_call_operand.vmem [shape: f32[8,216], index: 4, kind: input, shape index: {}]   ;;  %s2751_s5 = inlined_call_operand.vmem [shape: f32[8,1], index: 5, kind: input, shape index: {}]   ;;  %s2752_s6 = inlined_call_operand.vmem [shape: f32[8,1], index: 6, kind: input, shape index: {}]   ;;  %s2753_s7 = inlined_call_operand.vmem [shape: f32[2,8,256], index: 7, kind: output, shape index: {}]  }
   0x1 LB: > { %s1799_s25 = sadd.s32 4294967295, %s1994_s24   ;;  %p1803_p0 = scmp.ge.s32.totalorder %s1994_s24, 1  ;;  %s1994_s24 = sphi %s2062_s24, %s17_s24  }
   0x2   : > { %p237_p1 = scmp.lt.s32.totalorder %s1994_s24, 3 }
   0x4   : > { %p238_p2 = pnand %p1803_p0, %p237_p1 }
   0x5   : > { %p269_p3 = scmp.lt.s32.totalorder (!%p238_p2), %s1799_s25, 1  ;;  %s1996_s30 = smov (!%p238_p2), 16   ;;  %v2002_v2 = vmov (!%p238_p2), 0.0   ;;  %v2019_v3 = vmov (!%p238_p2), 0   ;;  %v510_v4 = vld [vmem:[%s2749_s3] sm:$0xff] (!%p238_p2)  ;;  %v826_v5 = vld [vmem:[%s2749_s3 + $0x8] sm:$0xff] (!%p238_p2)  ;;  %v285_v7 = vlaneseq (!%p238_p2) }
   0x6   : > { %241 = sbr.rel (%p238_p2) target bundleno = 853 (0x355), region = 48  ;;  %s1997_s8 = smov (!%p238_p2), 17   ;;  %584 = vmatprep.mubr.f32.mxu0 (!%p238_p2), %v2002_v2  ;;  %1986 = vset.pattern.permute.xlu0 (!%p238_p2), %v2019_v3  ;;  %v1141_v6 = vld [vmem:[%s2749_s3 + $0x10] sm:$0xff] (!%p238_p2)  ;;  %v290_v12 = vld [vmem:[%s2747_s1] ss:$8 sm:$0x3] (!%p238_p2) }
   0x7   : > { %s1998_s9 = smov (!%p238_p2), 15   ;;  %s1999_s10 = smov (!%p238_p2), 1   ;;  %1987 = vset.pattern.permute.xlu1 (!%p238_p2), %v2019_v3  ;;  %v293_v8 = vshrl.u32 (!%p238_p2), %v285_v7, 7  ;;  %v2160_v9 = vand.u32 (!%p238_p2), 127, %v285_v7  ;;  %vm516_vm9 = vcmask (!%p238_p2), 588800  }
   0x8   : > { %s2000_s11 = smov (!%p238_p2), 127   ;;  %s2001_s12 = smov (!%p238_p2), 113   ;;  %v1808_v13 = vld [vmem:[%s2747_s1 + $0x1] ss:$8 sm:$0x3] (!%p238_p2) }
   0x9   : > { %s2003_s13 = smov (!%p238_p2), 112   ;;  %s2004_s14 = smov (!%p238_p2), 111   ;;  %v2162_v10 = vsub.s32 (!%p238_p2), 0, %v293_v8  ;;  %v2164_v11 = vsub.s32 (!%p238_p2), 1, %v293_v8  ;;  %vm310_vm0 = vcmp.lt.s32.totalorder (!%p238_p2), %v2160_v9, 16  ;;  %vm287_vm1 = vcmp.lt.s32.totalorder (!%p238_p2), %v2160_v9, 17 }
   0xa   : > { %s2005_s15 = smov (!%p238_p2), 34   ;;  %s2006_s16 = smov (!%p238_p2), 32   ;;  %v1809_v30 = vld [vmem:[%s2747_s1 + $0x2] ss:$8 sm:$0x3] (!%p238_p2)  ;;  %vm334_vm2 = vcmp.lt.s32.totalorder (!%p238_p2), %v2160_v9, 15 }
   0xb   : > { %s2007_s17 = smov (!%p238_p2), 30   ;;  %s2008_s18 = smov (!%p238_p2), 2   ;;  %v295_v16 = vrot.slane (!%p238_p2), %v290_v12, %v2162_v10  ;;  %v299_v17 = vrot.slane (!%p238_p2), %v290_v12, %v2164_v11  ;;  %v323_v18 = vrot.slane (!%p238_p2), %v1808_v13, %v2164_v11  ;;  %v319_v19 = vrot.slane (!%p238_p2), %v1808_v13, %v2162_v10  ;;  %v1810_v31 = vld [vmem:[%s2747_s1 + $0x3] ss:$8 sm:$0x3] (!%p238_p2) }
   0xc   : > { %s2009_s19 = smov (!%p238_p2), 126   ;;  %s2010_s20 = smov (!%p238_p2), 98   ;;  %vm358_vm3 = vcmp.lt.s32.totalorder (!%p238_p2), %v2160_v9, 1  ;;  %v1811_v36 = vld [vmem:[%s2747_s1 + $0x4] ss:$8 sm:$0x3] (!%p238_p2)  ;;  %v343_v37 = vrot.slane (!%p238_p2), %v1809_v30, %v2162_v10  ;;  %v347_v38 = vrot.slane (!%p238_p2), %v1809_v30, %v2164_v11  ;;  %v367_v39 = vrot.slane (!%p238_p2), %v1810_v31, %v2162_v10 }
   0xd   : > { %s2755_s25 = smov (!%p269_p3, %s1799_s25), 1  ;;  %s2011_s21 = smov 96   ;;  %v371_v40 = vrot.slane %v1810_v31, %v2164_v11  ;;  %v1812_v41 = vld [vmem:[%s2747_s1 + $0x5] ss:$8 sm:$0x3]  ;;  %vm399_vm4 = vcmp.lt.s32.totalorder %v2160_v9, 127  ;;  %v388_v46 = vrot.slane %v1811_v36, %v2164_v11  ;;  %v384_v47 = vrot.slane %v1811_v36, %v2162_v10 }
   0xe   : > { %s1850_s26 = sshll.u32 %s2755_s25, 4  ;;  %s2012_s22 = smov 94   ;;  %v408_v50 = vrot.slane %v1812_v41, %v2162_v10  ;;  %v412_v51 = vrot.slane %v1812_v41, %v2164_v11  ;;  %vm423_vm5 = vcmp.lt.s32.totalorder %v2160_v9, 113  ;;  %vm447_vm6 = vcmp.lt.s32.totalorder %v2160_v9, 112 }
   0xf   : > { %s2078_s29 = scalar_lea.vmem %s2746_s0, %s1850_s26  ;;  %s2013_s23 = smov 51   ;;  %vm471_vm7 = vcmp.lt.s32.totalorder %v2160_v9, 111  ;;  %vm601_vm8 = vcmp.lt.s32.totalorder %v2160_v9, 34  ;;  %vm625_vm10 = vcmp.lt.s32.totalorder %v2160_v9, 32  ;;  %vm649_vm11 = vcmp.lt.s32.totalorder %v2160_v9, 30 }
  0x10   : > { %v2081_v0 = vld [vmem:[%s2078_s29] sm:$0xff]  ;;  %v2088_v1 = vld [vmem:[%s2078_s29 + $0x8] sm:$0xff]  ;;  %s2014_s27 = smov 48   ;;  %s2015_s28 = smov 45   ;;  %vm673_vm12 = vcmp.lt.s32.totalorder %v2160_v9, 2  ;;  %vm714_vm13 = vcmp.lt.s32.totalorder %v2160_v9, 126 }
  0x11   : > { %306 = vrot.lane.b32.xlu1 %v2081_v0, %s1996_s30  ;;  %281 = vrot.lane.b32.xlu0 %v2081_v0, %s1997_s8  ;;  %v392_v60 = vmul.f32 %v388_v46, %v2088_v1  ;;  %v391_v61 = vmul.f32 %v384_v47, %v2081_v0  ;;  %vm738_vm14 = vcmp.lt.s32.totalorder %v2160_v9, 98  ;;  %vm762_vm15 = vcmp.lt.s32.totalorder %v2160_v9, 96 }
  0x15   : > { %308 = vrot.lane.b32.xlu1 %v2088_v1, %s1996_s30  ;;  %283 = vrot.lane.b32.xlu0 %v2088_v1, %s1997_s8 }
  0x19   : > { %332 = vrot.lane.b32.xlu1 %v2088_v1, %s1998_s9  ;;  %330 = vrot.lane.b32.xlu0 %v2081_v0, %s1998_s9 }
  0x1d   : > { %356 = vrot.lane.b32.xlu1 %v2088_v1, %s1999_s10  ;;  %354 = vrot.lane.b32.xlu0 %v2081_v0, %s1999_s10 }
  0x21   : > { %397 = vrot.lane.b32.xlu1 %v2088_v1, %s2000_s11  ;;  %395 = vrot.lane.b32.xlu0 %v2081_v0, %s2000_s11 }
  0x25   : > { %421 = vrot.lane.b32.xlu1 %v2088_v1, %s2001_s12  ;;  %419 = vrot.lane.b32.xlu0 %v2081_v0, %s2001_s12 }
  0x29   : > { %445 = vrot.lane.b32.xlu1 %v2088_v1, %s2003_s13  ;;  %443 = vrot.lane.b32.xlu0 %v2081_v0, %s2003_s13 }
  0x2d   : > { %469 = vrot.lane.b32.xlu1 %v2088_v1, %s2004_s14  ;;  %467 = vrot.lane.b32.xlu0 %v2081_v0, %s2004_s14 }
  0x31   : > { %599 = vrot.lane.b32.xlu1 %v2088_v1, %s2005_s15  ;;  %597 = vrot.lane.b32.xlu0 %v2081_v0, %s2005_s15  ;;  %s2016_s15 = smov 3  }
  0x35   : > { %623 = vrot.lane.b32.xlu1 %v2088_v1, %s2006_s16  ;;  %621 = vrot.lane.b32.xlu0 %v2081_v0, %s2006_s16  ;;  %s2017_s16 = smov 125  }
  0x39   : > { %647 = vrot.lane.b32.xlu1 %v2088_v1, %s2007_s17  ;;  %645 = vrot.lane.b32.xlu0 %v2081_v0, %s2007_s17  ;;  %s2018_s17 = smov 83  }
  0x3d   : > { %671 = vrot.lane.b32.xlu1 %v2088_v1, %s2008_s18  ;;  %669 = vrot.lane.b32.xlu0 %v2081_v0, %s2008_s18  ;;  %s2020_s18 = smov 80  }
  0x41   : > { %712 = vrot.lane.b32.xlu1 %v2088_v1, %s2009_s19  ;;  %710 = vrot.lane.b32.xlu0 %v2081_v0, %s2009_s19  ;;  %s2021_s19 = smov 77  }
  0x45   : > { %736 = vrot.lane.b32.xlu1 %v2088_v1, %s2010_s20  ;;  %734 = vrot.lane.b32.xlu0 %v2081_v0, %s2010_s20 }
  0x49   : > { %760 = vrot.lane.b32.xlu1 %v2088_v1, %s2011_s21  ;;  %758 = vrot.lane.b32.xlu0 %v2081_v0, %s2011_s21 }
  0x4d   : > { %784 = vrot.lane.b32.xlu1 %v2088_v1, %s2012_s22  ;;  %782 = vrot.lane.b32.xlu0 %v2081_v0, %s2012_s22  ;;  %s278_s22 = scalar_lea.vmem %s2753_s7, %s1850_s26 }
  0x51   : > { %914 = vrot.lane.b32.xlu1 %v2088_v1, %s2013_s23  ;;  %912 = vrot.lane.b32.xlu0 %v2081_v0, %s2013_s23 }
  0x55   : > { %938 = vrot.lane.b32.xlu1 %v2088_v1, %s2014_s27  ;;  %936 = vrot.lane.b32.xlu0 %v2081_v0, %s2014_s27 }
  0x59   : > { %962 = vrot.lane.b32.xlu1 %v2088_v1, %s2015_s28  ;;  %960 = vrot.lane.b32.xlu0 %v2081_v0, %s2015_s28 }
  0x5d   : > { %986 = vrot.lane.b32.xlu1 %v2088_v1, %s2016_s15  ;;  %984 = vrot.lane.b32.xlu0 %v2081_v0, %s2016_s15 }
  0x61   : > { %1027 = vrot.lane.b32.xlu1 %v2088_v1, %s2017_s16  ;;  %1025 = vrot.lane.b32.xlu0 %v2081_v0, %s2017_s16 }
  0x65   : > { %1051 = vrot.lane.b32.xlu1 %v2088_v1, %s2018_s17  ;;  %1049 = vrot.lane.b32.xlu0 %v2081_v0, %s2018_s17 }
  0x69   : > { %1075 = vrot.lane.b32.xlu1 %v2088_v1, %s2020_s18  ;;  %1073 = vrot.lane.b32.xlu0 %v2081_v0, %s2020_s18 }
  0x6d   : > { %1099 = vrot.lane.b32.xlu1 %v2088_v1, %s2021_s19  ;;  %1097 = vrot.lane.b32.xlu0 %v2081_v0, %s2021_s19 }
  0x71   : > { %513 = vperm.xlu0 %1986, %v510_v4   ;;  %829 = vperm.xlu1 %1987, %v826_v5   ;;  %v1813_v5 = vld [vmem:[%s2747_s1 + $0x6] ss:$8 sm:$0x3] }
  0x75   : > { %1144 = vperm.xlu1 %1987, %v1141_v6   ;;  %v1814_v6 = vld [vmem:[%s2747_s1 + $0x7] ss:$8 sm:$0x3] }
  0x83   : > { %v307_v14 = vpop.permute.xlu1 %306  ;;  %v282_v15 = vpop.permute.xlu0 %281 }
  0x87   : > { %v309_v20 = vpop.permute.xlu1 %308  ;;  %v284_v21 = vpop.permute.xlu0 %283 }
  0x88   : > { %v312_v22 = vsel %vm310_vm0, %v309_v20, %v307_v14  ;;  %v288_v23 = vsel %vm287_vm1, %v282_v15, %v284_v21  ;;  %v289_v24 = vsel %vm287_vm1, %v284_v21, %v282_v15  ;;  %v311_v25 = vsel %vm310_vm0, %v307_v14, %v309_v20 }
  0x89   : > { %v302_v26 = vmul.f32 %v295_v16, %v289_v24  ;;  %v303_v27 = vmul.f32 %v299_v17, %v288_v23  ;;  %v327_v28 = vmul.f32 %v323_v18, %v311_v25  ;;  %v326_v29 = vmul.f32 %v319_v19, %v312_v22  ;;  %v1815_v18 = vld [vmem:[%s2747_s1 + $0x10] ss:$8 sm:$0x3] }
  0x8a   : > { %v432_v14 = vrot.slane %v1813_v5, %v2162_v10  ;;  %v436_v15 = vrot.slane %v1813_v5, %v2164_v11  ;;  %v456_v16 = vrot.slane %v1814_v6, %v2162_v10  ;;  %v460_v17 = vrot.slane %v1814_v6, %v2164_v11 }
  0x8b   : > { %v333_v32 = vpop.permute.xlu1 %332  ;;  %v331_v33 = vpop.permute.xlu0 %330  ;;  %v1852_v34 = vpack.c.bf16 %v327_v28, %v303_v27  ;;  %v1854_v35 = vpack.c.bf16 %v326_v29, %v302_v26  ;;  %v484_v25 = vrot.slane %v1815_v18, %v2164_v11 }
  0x8c   : > { %v335_v42 = vsel %vm334_vm2, %v331_v33, %v333_v32  ;;  %v336_v43 = vsel %vm334_vm2, %v333_v32, %v331_v33 }
  0x8d   : > { %1853 = vmatprep.subr.bf16.mxu0 %v1852_v34  ;;  %v350_v52 = vmul.f32 %v343_v37, %v336_v43  ;;  %v351_v53 = vmul.f32 %v347_v38, %v335_v42  ;;  %v480_v34 = vrot.slane %v1815_v18, %v2162_v10  ;;  %v1817_v38 = vld [vmem:[%s2747_s1 + $0x11] ss:$8 sm:$0x3] }
  0x8e   : > { %1855 = vmatpush1.bf16.msra.mxu0 %v1854_v35  ;;  %v610_v43 = vrot.slane %v1817_v38, %v2162_v10 }
  0x8f   : > { %v357_v44 = vpop.permute.xlu1 %356  ;;  %v355_v45 = vpop.permute.xlu0 %354 }
  0x90   : > { %v359_v48 = vsel %vm358_vm3, %v355_v45, %v357_v44  ;;  %v360_v49 = vsel %vm358_vm3, %v357_v44, %v355_v45  ;;  %v491_v44 = vld [vmem:[%s2748_s2] sm:$0xff]  ;;  %v614_v45 = vrot.slane %v1817_v38, %v2164_v11 }
  0x91   : > { %v374_v54 = vmul.f32 %v367_v39, %v360_v49  ;;  %v375_v55 = vmul.f32 %v371_v40, %v359_v48  ;;  %v1818_v39 = vld [vmem:[%s2747_s1 + $0x12] ss:$8 sm:$0x3] }
  0x92   : > { %v634_v46 = vrot.slane %v1818_v39, %v2162_v10  ;;  %v638_v47 = vrot.slane %v1818_v39, %v2164_v11 }
  0x93   : > { %v398_v56 = vpop.permute.xlu1 %397  ;;  %v396_v57 = vpop.permute.xlu0 %395  ;;  %v1856_v58 = vpack.c.bf16 %v375_v55, %v351_v53  ;;  %v1858_v59 = vpack.c.bf16 %v374_v54, %v350_v52 }
  0x94   : > { %v400_v62 = vsel %vm399_vm4, %v396_v57, %v398_v56  ;;  %v401_v63 = vsel %vm399_vm4, %v398_v56, %v396_v57 }
  0x95   : > { %v415_v3 = vmul.f32 %v408_v50, %v400_v62  ;;  %v416_v4 = vmul.f32 %v412_v51, %v401_v63  ;;  %1857 = vmatprep.subr.bf16.mxu0 %v1856_v58  ;;  %v1819_v58 = vld [vmem:[%s2747_s1 + $0x13] ss:$8 sm:$0x3] }
  0x96   : > { %1859 = vmatpush1.bf16.msra.mxu0 %v1858_v59  ;;  %v1820_v59 = vld [vmem:[%s2747_s1 + $0x14] ss:$8 sm:$0x3]  ;;  %v662_v5 = vrot.slane %v1819_v58, %v2164_v11 }
  0x97   : > { %v422_v7 = vpop.permute.xlu1 %421  ;;  %v420_v8 = vpop.permute.xlu0 %419  ;;  %v1860_v12 = vpack.c.bf16 %v416_v4, %v392_v60  ;;  %v1862_v13 = vpack.c.bf16 %v415_v3, %v391_v61  ;;  %v658_v3 = vrot.slane %v1819_v58, %v2162_v10  ;;  %v1821_v4 = vld [vmem:[%s2747_s1 + $0x15] ss:$8 sm:$0x3]  ;;  %v682_v6 = vrot.slane %v1820_v59, %v2162_v10 }
  0x98   : > { %v424_v19 = vsel %vm423_vm5, %v420_v8, %v422_v7  ;;  %v425_v20 = vsel %vm423_vm5, %v422_v7, %v420_v8  ;;  %v686_v7 = vrot.slane %v1820_v59, %v2164_v11  ;;  %v1822_v8 = vld [vmem:[%s2747_s1 + $0x16] ss:$8 sm:$0x3] }
  0x99   : > { %1861 = vmatprep.subr.bf16.mxu0 %v1860_v12  ;;  %v439_v26 = vmul.f32 %v432_v14, %v424_v19  ;;  %v440_v27 = vmul.f32 %v436_v15, %v425_v20  ;;  %v723_v20 = vrot.slane %v1822_v8, %v2162_v10 }
  0x9a   : > { %1863 = vmatpush1.bf16.msra.mxu0 %v1862_v13 }
  0x9b   : > { %v446_v21 = vpop.permute.xlu1 %445  ;;  %v444_v22 = vpop.permute.xlu0 %443 }
  0x9c   : > { %v448_v23 = vsel %vm447_vm6, %v444_v22, %v446_v21  ;;  %v449_v24 = vsel %vm447_vm6, %v446_v21, %v444_v22  ;;  %v727_v21 = vrot.slane %v1822_v8, %v2164_v11 }
  0x9d   : > { %v463_v28 = vmul.f32 %v456_v16, %v448_v23  ;;  %v464_v29 = vmul.f32 %v460_v17, %v449_v24  ;;  %v699_v16 = vrot.slane %v1821_v4, %v2162_v10  ;;  %v703_v17 = vrot.slane %v1821_v4, %v2164_v11 }
  0x9f   : > { %v470_v30 = vpop.permute.xlu1 %469  ;;  %v468_v31 = vpop.permute.xlu0 %467  ;;  %v1864_v32 = vpack.c.bf16 %v464_v29, %v440_v27  ;;  %v1866_v33 = vpack.c.bf16 %v463_v28, %v439_v26  ;;  %v706_v28 = vmul.f32 %v699_v16, %v2081_v0 }
  0xa0   : > { %v473_v35 = vsel %vm471_vm7, %v470_v30, %v468_v31  ;;  %v472_v36 = vsel %vm471_vm7, %v468_v31, %v470_v30  ;;  %v707_v31 = vmul.f32 %v703_v17, %v2088_v1 }
  0xa1   : > { %v488_v37 = vmul.f32 %v484_v25, %v473_v35  ;;  %1865 = vmatprep.subr.bf16.mxu0 %v1864_v32  ;;  %v487_v42 = vmul.f32 %v480_v34, %v472_v36  ;;  %v1823_v36 = vld [vmem:[%s2747_s1 + $0x17] ss:$8 sm:$0x3] }
  0xa2   : > { %1867 = vmatpush1.bf16.msra.mxu0 %v1866_v33 }
  0xa3   : > { %v600_v40 = vpop.permute.xlu1 %599  ;;  %v598_v41 = vpop.permute.xlu0 %597  ;;  %536 = vmatprep.subr.mxu0 %v488_v37  ;;  %v1824_v37 = vld [vmem:[%s2747_s1 + $0x20] ss:$8 sm:$0x3] }
  0xa4   : > { %v602_v48 = vsel %vm601_vm8, %v598_v41, %v600_v40  ;;  %v603_v49 = vsel %vm601_vm8, %v600_v40, %v598_v41  ;;  %vm786_vm8 = vcmp.lt.s32.totalorder %v2160_v9, 94 }
  0xa5   : > { %v617_v54 = vmul.f32 %v610_v43, %v603_v49  ;;  %v618_v55 = vmul.f32 %v614_v45, %v602_v48  ;;  %v751_v43 = vrot.slane %v1823_v36, %v2164_v11  ;;  %v775_v45 = vrot.slane %v1824_v37, %v2164_v11 }
  0xa6   : > { %537 = vmatpush1.msra.mxu0 %v487_v42  ;;  %v747_v42 = vrot.slane %v1823_v36, %v2162_v10 }
  0xa7   : > { %v624_v50 = vpop.permute.xlu1 %623  ;;  %v622_v51 = vpop.permute.xlu0 %621  ;;  %1816 = vmatmul.mubr.msk.f32.vlgmr.msra.gmra.mrb[0].mxu0 %vm516_vm9, %v491_v44  ;;  %v771_v44 = vrot.slane %v1824_v37, %v2162_v10 }
  0xa8   : > { %v626_v52 = vsel %vm625_vm10, %v622_v51, %v624_v50  ;;  %v627_v53 = vsel %vm625_vm10, %v624_v50, %v622_v51  ;;  %899 = vmatprep.mubr.f32.mxu0 %v2002_v2  ;;  %vm916_vm10 = vcmp.lt.s32.totalorder %v2160_v9, 51 }
  0xa9   : > { %v641_v56 = vmul.f32 %v634_v46, %v627_v53  ;;  %v642_v57 = vmul.f32 %v638_v47, %v626_v52  ;;  %v1825_v46 = vld [vmem:[%s2747_s1 + $0x21] ss:$8 sm:$0x3] }
  0xaa   : > { %v799_v53 = vrot.slane %v1825_v46, %v2164_v11 }
  0xab   : > { %v1870_v60 = vpack.c.bf16 %v641_v56, %v617_v54  ;;  %v648_v61 = vpop.permute.xlu1 %647  ;;  %v646_v62 = vpop.permute.xlu0 %645  ;;  %v1868_v63 = vpack.c.bf16 %v642_v57, %v618_v55 }
  0xac   : > { %v650_v12 = vsel %vm649_vm11, %v646_v62, %v648_v61  ;;  %v651_v13 = vsel %vm649_vm11, %v648_v61, %v646_v62  ;;  %v795_v62 = vrot.slane %v1825_v46, %v2162_v10  ;;  %vm940_vm11 = vcmp.lt.s32.totalorder %v2160_v9, 48 }
  0xad   : > { %1869 = vmatprep.subr.bf16.mxu0 %v1868_v63  ;;  %v665_v22 = vmul.f32 %v658_v3, %v651_v13  ;;  %v666_v23 = vmul.f32 %v662_v5, %v650_v12  ;;  %v1828_v5 = vld [vmem:[%s2747_s1 + $0x22] ss:$8 sm:$0x3] }
  0xae   : > { %1871 = vmatpush1.bf16.msra.mxu0 %v1870_v60  ;;  %v925_v13 = vrot.slane %v1828_v5, %v2162_v10 }
  0xaf   : > { %v672_v14 = vpop.permute.xlu1 %671  ;;  %v670_v15 = vpop.permute.xlu0 %669 }
  0xb0   : > { %v674_v18 = vsel %vm673_vm12, %v670_v15, %v672_v14  ;;  %v675_v19 = vsel %vm673_vm12, %v672_v14, %v670_v15  ;;  %v1826_v14 = vld [vmem:[%s2748_s2 + $0x8] sm:$0xff]  ;;  %v929_v15 = vrot.slane %v1828_v5, %v2164_v11  ;;  %vm964_vm12 = vcmp.lt.s32.totalorder %v2160_v9, 45 }
  0xb1   : > { %v689_v24 = vmul.f32 %v682_v6, %v675_v19  ;;  %v690_v25 = vmul.f32 %v686_v7, %v674_v18  ;;  %v1829_v6 = vld [vmem:[%s2747_s1 + $0x23] ss:$8 sm:$0x3] }
  0xb2   : > { %v949_v16 = vrot.slane %v1829_v6, %v2162_v10  ;;  %v953_v17 = vrot.slane %v1829_v6, %v2164_v11 }
  0xb3   : > { %v1874_v26 = vpack.c.bf16 %v689_v24, %v665_v22  ;;  %v713_v27 = vpop.permute.xlu1 %712  ;;  %v711_v29 = vpop.permute.xlu0 %710  ;;  %v1872_v30 = vpack.c.bf16 %v690_v25, %v666_v23 }
  0xb4   : > { %v715_v32 = vsel %vm714_vm13, %v711_v29, %v713_v27  ;;  %v716_v33 = vsel %vm714_vm13, %v713_v27, %v711_v29  ;;  %v1831_v29 = vld [vmem:[%s2747_s1 + $0x25] ss:$8 sm:$0x3]  ;;  %vm988_vm13 = vcmp.lt.s32.totalorder %v2160_v9, 3 }
  0xb5   : > { %v730_v34 = vmul.f32 %v723_v20, %v715_v32  ;;  %v731_v35 = vmul.f32 %v727_v21, %v716_v33  ;;  %1873 = vmatprep.subr.bf16.mxu0 %v1872_v30  ;;  %v997_v36 = vrot.slane %v1831_v29, %v2162_v10  ;;  %v1001_v37 = vrot.slane %v1831_v29, %v2164_v11 }
  0xb6   : > { %1875 = vmatpush1.bf16.msra.mxu0 %v1874_v26 }
  0xb7   : > { %v1878_v38 = vpack.c.bf16 %v730_v34, %v706_v28  ;;  %v737_v39 = vpop.permute.xlu1 %736  ;;  %v735_v40 = vpop.permute.xlu0 %734  ;;  %v1876_v41 = vpack.c.bf16 %v731_v35, %v707_v31  ;;  %v1830_v28 = vld [vmem:[%s2747_s1 + $0x24] ss:$8 sm:$0x3]  ;;  %v1832_v34 = vld [vmem:[%s2747_s1 + $0x26] ss:$8 sm:$0x3] }
  0xb8   : > { %v739_v47 = vsel %vm738_vm14, %v735_v40, %v737_v39  ;;  %v740_v48 = vsel %vm738_vm14, %v737_v39, %v735_v40  ;;  %v977_v35 = vrot.slane %v1830_v28, %v2164_v11  ;;  %vm1029_vm14 = vcmp.lt.s32.totalorder %v2160_v9, 125 }
  0xb9   : > { %1877 = vmatprep.subr.bf16.mxu0 %v1876_v41  ;;  %v754_v54 = vmul.f32 %v747_v42, %v739_v47  ;;  %v755_v55 = vmul.f32 %v751_v43, %v740_v48  ;;  %v1014_v43 = vrot.slane %v1832_v34, %v2162_v10 }
  0xba   : > { %1879 = vmatpush1.bf16.msra.mxu0 %v1878_v38  ;;  %v1833_v38 = vld [vmem:[%s2747_s1 + $0x27] ss:$8 sm:$0x3] }
  0xbb   : > { %v761_v49 = vpop.permute.xlu1 %760  ;;  %v759_v50 = vpop.permute.xlu0 %758  ;;  %v1038_v47 = vrot.slane %v1833_v38, %v2162_v10  ;;  %v1042_v48 = vrot.slane %v1833_v38, %v2164_v11 }
  0xbc   : > { %v763_v51 = vsel %vm762_vm15, %v759_v50, %v761_v49  ;;  %v764_v52 = vsel %vm762_vm15, %v761_v49, %v759_v50  ;;  %vm1053_vm15 = vcmp.lt.s32.totalorder %v2160_v9, 83 }
  0xbd   : > { %v778_v56 = vmul.f32 %v771_v44, %v763_v51  ;;  %v779_v57 = vmul.f32 %v775_v45, %v764_v52  ;;  %v1018_v44 = vrot.slane %v1832_v34, %v2164_v11 }
  0xbf   : > { %v1882_v58 = vpack.c.bf16 %v778_v56, %v754_v54  ;;  %v785_v59 = vpop.permute.xlu1 %784  ;;  %v783_v60 = vpop.permute.xlu0 %782  ;;  %v1880_v61 = vpack.c.bf16 %v779_v57, %v755_v55  ;;  %v1021_v55 = vmul.f32 %v1014_v43, %v2081_v0  ;;  %v1835_v0 = vld [vmem:[%s2747_s1 + $0x31] ss:$8 sm:$0x3] }
  0xc0   : > { %v788_v63 = vsel %vm786_vm8, %v785_v59, %v783_v60  ;;  %v787_v3 = vsel %vm786_vm8, %v783_v60, %v785_v59  ;;  %vm1077_vm8 = vcmp.lt.s32.totalorder %v2160_v9, 80 }
  0xc1   : > { %v803_v4 = vmul.f32 %v799_v53, %v788_v63  ;;  %1881 = vmatprep.subr.bf16.mxu0 %v1880_v61  ;;  %v802_v12 = vmul.f32 %v795_v62, %v787_v3  ;;  %v1834_v63 = vld [vmem:[%s2747_s1 + $0x30] ss:$8 sm:$0x3] }
  0xc2   : > { %1883 = vmatpush1.bf16.msra.mxu0 %v1882_v58  ;;  %v1022_v58 = vmul.f32 %v1018_v44, %v2088_v1  ;;  %v1062_v6 = vrot.slane %v1834_v63, %v2162_v10 }
  0xc3   : > { %v915_v7 = vpop.permute.xlu1 %914  ;;  %v913_v8 = vpop.permute.xlu0 %912  ;;  %851 = vmatprep.subr.mxu0 %v803_v4 }
  0xc4   : > { %v917_v18 = vsel %vm916_vm10, %v913_v8, %v915_v7  ;;  %v918_v19 = vsel %vm916_vm10, %v915_v7, %v913_v8  ;;  %v1066_v7 = vrot.slane %v1834_v63, %v2164_v11  ;;  %v1086_v8 = vrot.slane %v1835_v0, %v2162_v10 }
  0xc5   : > { %v932_v24 = vmul.f32 %v925_v13, %v918_v19  ;;  %v933_v25 = vmul.f32 %v929_v15, %v917_v18  ;;  %v1836_v13 = vld [vmem:[%s2747_s1 + $0x32] ss:$8 sm:$0x3]  ;;  %vm1101_vm10 = vcmp.lt.s32.totalorder %v2160_v9, 77 }
  0xc6   : > { %852 = vmatpush1.msra.mxu0 %v802_v12  ;;  %v1090_v12 = vrot.slane %v1835_v0, %v2164_v11  ;;  %v1842_v0 = vld [vmem:[%s2747_s1 + $0x4] ss:$8 sm:$0x3] }
  0xc7   : > { %v939_v20 = vpop.permute.xlu1 %938  ;;  %v937_v21 = vpop.permute.xlu0 %936  ;;  %1827 = vmatmul.mubr.msk.f32.vlgmr.msra.gmra.mrb[2].mxu0 %vm516_vm9, %v1826_v14 }
  0xc8   : > { %v941_v22 = vsel %vm940_vm11, %v937_v21, %v939_v20  ;;  %v942_v23 = vsel %vm940_vm11, %v939_v20, %v937_v21  ;;  %1214 = vmatprep.mubr.f32.mxu0 %v2002_v2  ;;  %v973_v2 = vrot.slane %v1830_v28, %v2162_v10  ;;  %v1114_v20 = vrot.slane %v1836_v13, %v2164_v11 }
  0xc9   : > { %v956_v26 = vmul.f32 %v949_v16, %v942_v23  ;;  %v957_v27 = vmul.f32 %v953_v17, %v941_v22 }
  0xcb   : > { %v1886_v30 = vpack.c.bf16 %v956_v26, %v932_v24  ;;  %v963_v31 = vpop.permute.xlu1 %962  ;;  %v961_v32 = vpop.permute.xlu0 %960  ;;  %v1884_v33 = vpack.c.bf16 %v957_v27, %v933_v25  ;;  %v1110_v25 = vrot.slane %v1836_v13, %v2162_v10 }
  0xcc   : > { %v965_v39 = vsel %vm964_vm12, %v961_v32, %v963_v31  ;;  %v966_v40 = vsel %vm964_vm12, %v963_v31, %v961_v32 }
  0xcd   : > { %1885 = vmatprep.subr.bf16.mxu0 %v1884_v33  ;;  %v980_v49 = vmul.f32 %v973_v2, %v966_v40  ;;  %v981_v50 = vmul.f32 %v977_v35, %v965_v39  ;;  %v1837_v2 = vld [vmem:[%s2748_s2 + $0x10] sm:$0xff] }
  0xce   : > { %1887 = vmatpush1.bf16.msra.mxu0 %v1886_v30 }
  0xcf   : > { %v987_v41 = vpop.permute.xlu1 %986  ;;  %v985_v42 = vpop.permute.xlu0 %984 }
  0xd0   : > { %v989_v45 = vsel %vm988_vm13, %v985_v42, %v987_v41  ;;  %v990_v46 = vsel %vm988_vm13, %v987_v41, %v985_v42 }
  0xd1   : > { %v1004_v51 = vmul.f32 %v997_v36, %v990_v46  ;;  %v1005_v52 = vmul.f32 %v1001_v37, %v989_v45 }
  0xd3   : > { %v1890_v53 = vpack.c.bf16 %v1004_v51, %v980_v49  ;;  %v1028_v54 = vpop.permute.xlu1 %1027  ;;  %v1026_v56 = vpop.permute.xlu0 %1025  ;;  %v1888_v57 = vpack.c.bf16 %v1005_v52, %v981_v50 }
  0xd4   : > { %v1030_v59 = vsel %vm1029_vm14, %v1026_v56, %v1028_v54  ;;  %v1031_v60 = vsel %vm1029_vm14, %v1028_v54, %v1026_v56 }
  0xd5   : > { %v1045_v61 = vmul.f32 %v1038_v47, %v1030_v59  ;;  %v1046_v62 = vmul.f32 %v1042_v48, %v1031_v60  ;;  %1889 = vmatprep.subr.bf16.mxu0 %v1888_v57  ;;  %v1592_v59 = vld [vmem:[%s2750_s4 + $0x8] sm:$0xff] }
  0xd6   : > { %1891 = vmatpush1.bf16.msra.mxu0 %v1890_v53 }
  0xd7   : > { %v1894_v3 = vpack.c.bf16 %v1045_v61, %v1021_v55  ;;  %v1052_v1 = vpop.permute.xlu1 %1051  ;;  %v1050_v4 = vpop.permute.xlu0 %1049  ;;  %v1892_v5 = vpack.c.bf16 %v1046_v62, %v1022_v58  ;;  %v1649_v55 = vld [vmem:[%s2751_s5] sm:$0xff] }
  0xd8   : > { %v1054_v14 = vsel %vm1053_vm15, %v1050_v4, %v1052_v1  ;;  %v1055_v15 = vsel %vm1053_vm15, %v1052_v1, %v1050_v4  ;;  %v1843_v62 = vld [vmem:[%s2747_s1 + $0x5] ss:$8 sm:$0x3] }
  0xd9   : > { %1893 = vmatprep.subr.bf16.mxu0 %v1892_v5  ;;  %v1069_v21 = vmul.f32 %v1062_v6, %v1054_v14  ;;  %v1070_v22 = vmul.f32 %v1066_v7, %v1055_v15  ;;  %v2496_v1 = vrot.slane %v1843_v62, %v2162_v10  ;;  %v2499_v4 = vrot.slane %v1843_v62, %v2164_v11  ;;  %v1732_v5 = vld [vmem:[%s2752_s6] sm:$0xff] }
  0xda   : > { %1895 = vmatpush1.bf16.msra.mxu0 %v1894_v3  ;;  %v2505_v7 = vrot.slane %v1842_v0, %v2164_v11 }
  0xdb   : > { %v1076_v16 = vpop.permute.xlu1 %1075  ;;  %v1074_v17 = vpop.permute.xlu0 %1073 }
  0xdc   : > { %v1078_v18 = vsel %vm1077_vm8, %v1074_v17, %v1076_v16  ;;  %v1079_v19 = vsel %vm1077_vm8, %v1076_v16, %v1074_v17 }
  0xdd   : > { %v1093_v23 = vmul.f32 %v1086_v8, %v1078_v18  ;;  %v1094_v24 = vmul.f32 %v1090_v12, %v1079_v19  ;;  %v2508_v8 = vrot.slane %v1842_v0, %v2162_v10 }
  0xdf   : > { %v1898_v26 = vpack.c.bf16 %v1093_v23, %v1069_v21  ;;  %v1100_v27 = vpop.permute.xlu1 %1099  ;;  %v1098_v28 = vpop.permute.xlu0 %1097  ;;  %v1896_v29 = vpack.c.bf16 %v1094_v24, %v1070_v22  ;;  %v1249_v22 = vld [vmem:[%s2747_s1] ss:$8 sm:$0x3] }
  0xe0   : > { %v1102_v30 = vsel %vm1101_vm10, %v1098_v28, %v1100_v27  ;;  %v1103_v31 = vsel %vm1101_vm10, %v1100_v27, %v1098_v28  ;;  %v1254_v24 = vrot.slane %v1249_v22, %v2162_v10 }
  0xe1   : > { %v1118_v32 = vmul.f32 %v1114_v20, %v1103_v31  ;;  %1897 = vmatprep.subr.bf16.mxu0 %v1896_v29  ;;  %v1117_v33 = vmul.f32 %v1110_v25, %v1102_v30 }
  0xe2   : > { %1899 = vmatpush1.bf16.msra.mxu0 %v1898_v26  ;;  %v1258_v26 = vrot.slane %v1249_v22, %v2164_v11 }
  0xe3   : > { %1166 = vmatprep.subr.mxu0 %v1118_v32 }
  0xe6   : > { %1167 = vmatpush1.msra.mxu0 %v1117_v33 }
  0xe7   : > { %1838 = vmatmul.mubr.msk.f32.vlgmr.msra.gmra.mrb[4].mxu0 %vm516_vm9, %v1837_v2  ;;  %vm1657_vm9 = vcmask 719872  }
  0xe8   : > { %1847 = vmatprep.mubr.msk.f32.mxu1 %vm1657_vm9, %v1592_v59 }
  0xf0   : > { %v514_v34 = vpop.permute.xlu0 %513  ;;  %v830_v41 = vpop.permute.xlu1 %829 }
  0xf4   : > { %v1145_v48 = vpop.permute.xlu1 %1144 }
 0x17a   : > { %v586_v35 = vpop.f32.mrb[0].mxu0 }
 0x17b   : > { %v587_v36 = vadd.f32 %v586_v35, %v514_v34  ;;  %v588_v37 = vpop.f32.mrb[1].mxu0 }
 0x17c   : > { %v589_v38 = vadd.f32 %v588_v37, %v514_v34 }
 0x17d   : > { %v2385_v39 = vmax.f32 %v587_v36, 0.0 }
 0x17e   : > { %v2387_v40 = vmax.f32 %v589_v38, 0.0 }
 0x17f   : > { %1231 = vrot.lane.b32.xlu0 %v2385_v39, %s1997_s8 }
 0x180   : > { %1279 = vrot.lane.b32.xlu1 %v2387_v40, %s1996_s30 }
 0x183   : > { %1273 = vrot.lane.b32.xlu0 %v2385_v39, %s1996_s30 }
 0x184   : > { %1363 = vrot.lane.b32.xlu1 %v2387_v40, %s1999_s10 }
 0x187   : > { %1315 = vrot.lane.b32.xlu0 %v2385_v39, %s1998_s9 }
 0x188   : > { %1429 = vrot.lane.b32.xlu1 %v2387_v40, %s2000_s11 }
 0x18b   : > { %1357 = vrot.lane.b32.xlu0 %v2385_v39, %s1999_s10 }
 0x18f   : > { %1423 = vrot.lane.b32.xlu0 %v2385_v39, %s2000_s11 }
 0x193   : > { %1237 = vrot.lane.b32.xlu0 %v2387_v40, %s1997_s8 }
 0x197   : > { %1321 = vrot.lane.b32.xlu0 %v2387_v40, %s1998_s9 }
 0x19a   : > { %v901_v42 = vpop.f32.mrb[2].mxu0 }
 0x19b   : > { %v902_v43 = vadd.f32 %v901_v42, %v830_v41  ;;  %v903_v44 = vpop.f32.mrb[3].mxu0 }
 0x19c   : > { %v904_v46 = vadd.f32 %v903_v44, %v830_v41 }
 0x19d   : > { %v2409_v45 = vmax.f32 %v902_v43, 0.0 }
 0x19e   : > { %v2419_v47 = vmax.f32 %v904_v46, 0.0 }
 0x19f   : > { %1233 = vrot.lane.b32.xlu1 %v2409_v45, %s1997_s8  ;;  %1275 = vrot.lane.b32.xlu0 %v2409_v45, %s1996_s30 }
 0x1a3   : > { %1317 = vrot.lane.b32.xlu1 %v2409_v45, %s1998_s9  ;;  %1359 = vrot.lane.b32.xlu0 %v2409_v45, %s1999_s10 }
 0x1a7   : > { %1239 = vrot.lane.b32.xlu1 %v2419_v47, %s1997_s8  ;;  %1281 = vrot.lane.b32.xlu0 %v2419_v47, %s1996_s30 }
 0x1ab   : > { %1323 = vrot.lane.b32.xlu1 %v2419_v47, %s1998_s9  ;;  %1365 = vrot.lane.b32.xlu0 %v2419_v47, %s1999_s10 }
 0x1ba   : > { %v1216_v49 = vpop.f32.mrb[4].mxu0 }
 0x1bb   : > { %v1217_v50 = vadd.f32 %v1216_v49, %v1145_v48  ;;  %v1218_v51 = vpop.f32.mrb[5].mxu0 }
 0x1bc   : > { %v1219_v53 = vadd.f32 %v1218_v51, %v1145_v48 }
 0x1bd   : > { %v1221_v52 = vmax.f32 %v1217_v50, 0.0 }
 0x1be   : > { %v1222_v54 = vmax.f32 %v1219_v53, 0.0 }
 0x1bf   : > { %1277 = vrot.lane.b32.xlu1 %v1221_v52, %s1996_s30  ;;  %1235 = vrot.lane.b32.xlu0 %v1221_v52, %s1997_s8  ;;  %v2524_v17 = vmul.f32 %v2508_v8, %v1221_v52 }
 0x1c0   : > { %v2521_v16 = vmul.f32 %v2505_v7, %v1222_v54 }
 0x1c3   : > { %1467 = vrot.lane.b32.xlu1 %v2409_v45, %s2001_s12  ;;  %1425 = vrot.lane.b32.xlu0 %v2409_v45, %s2000_s11 }
 0x1c7   : > { %1361 = vrot.lane.b32.xlu1 %v1221_v52, %s1999_s10  ;;  %1431 = vrot.lane.b32.xlu0 %v2419_v47, %s2000_s11 }
 0x1cb   : > { %1427 = vrot.lane.b32.xlu1 %v1221_v52, %s2000_s11  ;;  %1319 = vrot.lane.b32.xlu0 %v1221_v52, %s1998_s9 }
 0x1cf   : > { %1241 = vrot.lane.b32.xlu1 %v1222_v54, %s1997_s8  ;;  %1465 = vrot.lane.b32.xlu0 %v2385_v39, %s2001_s12 }
 0x1d3   : > { %1283 = vrot.lane.b32.xlu1 %v1222_v54, %s1996_s30  ;;  %1471 = vrot.lane.b32.xlu0 %v2387_v40, %s2001_s12 }
 0x1d7   : > { %1473 = vrot.lane.b32.xlu1 %v2419_v47, %s2001_s12  ;;  %1469 = vrot.lane.b32.xlu0 %v1221_v52, %s2001_s12 }
 0x1db   : > { %1325 = vrot.lane.b32.xlu1 %v1222_v54, %s1998_s9  ;;  %1507 = vrot.lane.b32.xlu0 %v2385_v39, %s2003_s13 }
 0x1df   : > { %1367 = vrot.lane.b32.xlu1 %v1222_v54, %s1999_s10  ;;  %1509 = vrot.lane.b32.xlu0 %v2409_v45, %s2003_s13 }
 0x1e3   : > { %1513 = vrot.lane.b32.xlu1 %v2387_v40, %s2003_s13  ;;  %1515 = vrot.lane.b32.xlu0 %v2419_v47, %s2003_s13 }
 0x1e7   : > { %1511 = vrot.lane.b32.xlu1 %v1221_v52, %s2003_s13  ;;  %1549 = vrot.lane.b32.xlu0 %v2385_v39, %s2004_s14 }
 0x1eb   : > { %1433 = vrot.lane.b32.xlu1 %v1222_v54, %s2000_s11  ;;  %1555 = vrot.lane.b32.xlu0 %v2387_v40, %s2004_s14 }
 0x1ef   : > { %1551 = vrot.lane.b32.xlu1 %v2409_v45, %s2004_s14  ;;  %1553 = vrot.lane.b32.xlu0 %v1221_v52, %s2004_s14  ;;  %v1839_v52 = vld [vmem:[%s2747_s1 + $0x1] ss:$8 sm:$0x3] }
 0x1f1   : > { %v1232_v56 = vpop.permute.xlu0 %1231 }
 0x1f2   : > { %v2472_v57 = vpop.permute.xlu1 %1279 }
 0x1f3   : > { %1475 = vrot.lane.b32.xlu1 %v1222_v54, %s2001_s12  ;;  %1652 = vperm.xlu0 %1986, %v1649_v55   ;;  %v1296_v55 = vrot.slane %v1839_v52, %v2162_v10 }
 0x1f5   : > { %v2474_v58 = vpop.permute.xlu0 %1273 }
 0x1f6   : > { %v2482_v61 = vpop.permute.xlu1 %1363  ;;  %v1285_v59 = vsel %vm310_vm0, %v2474_v58, %v2472_v57  ;;  %v1288_v62 = vsel %vm310_vm0, %v2472_v57, %v2474_v58 }
 0x1f7   : > { %1517 = vrot.lane.b32.xlu1 %v1222_v54, %s2003_s13 }
 0x1f9   : > { %v2480_v60 = vpop.permute.xlu0 %1315 }
 0x1fa   : > { %v1430_v3 = vpop.permute.xlu1 %1429 }
 0x1fb   : > { %1557 = vrot.lane.b32.xlu1 %v2419_v47, %s2004_s14 }
 0x1fd   : > { %v2489_v63 = vpop.permute.xlu0 %1357 }
 0x1ff   : > { %1559 = vrot.lane.b32.xlu1 %v1222_v54, %s2004_s14 }
 0x201   : > { %v1424_v6 = vpop.permute.xlu0 %1423 }
 0x202   : > { %v1435_v12 = vsel %vm399_vm4, %v1424_v6, %v1430_v3  ;;  %v1438_v13 = vsel %vm399_vm4, %v1430_v3, %v1424_v6 }
 0x203   : > { %v2515_v14 = vmul.f32 %v2496_v1, %v1435_v12  ;;  %v2518_v15 = vmul.f32 %v2499_v4, %v1438_v13  ;;  %1735 = vperm.xlu1 %1987, %v1732_v5   ;;  %v1303_v5 = vmul.f32 %v1296_v55, %v1288_v62  ;;  %v1840_v12 = vld [vmem:[%s2747_s1 + $0x2] ss:$8 sm:$0x3] }
 0x205   : > { %v1928_v18 = vpack.c.bf16 %v2518_v15, %v2521_v16  ;;  %v1930_v19 = vpack.c.bf16 %v2515_v14, %v2524_v17  ;;  %v1238_v20 = vpop.permute.xlu0 %1237 }
 0x206   : > { %v1243_v27 = vsel %vm287_vm1, %v1232_v56, %v1238_v20  ;;  %v1246_v28 = vsel %vm287_vm1, %v1238_v20, %v1232_v56  ;;  %v1300_v56 = vrot.slane %v1839_v52, %v2164_v11  ;;  %v1338_v52 = vrot.slane %v1840_v12, %v2162_v10 }
 0x207   : > { %v1261_v32 = vmul.f32 %v1254_v24, %v1246_v28  ;;  %v1262_v34 = vmul.f32 %v1258_v26, %v1243_v27  ;;  %v1342_v28 = vrot.slane %v1840_v12, %v2164_v11  ;;  %v1369_v12 = vsel %vm358_vm3, %v2489_v63, %v2482_v61 }
 0x208   : > { %v1304_v6 = vmul.f32 %v1300_v56, %v1285_v59 }
 0x209   : > { %v2534_v25 = vpop.permute.xlu0 %1321 }
 0x20a   : > { %v1330_v59 = vsel %vm334_vm2, %v2534_v25, %v2480_v60 }
 0x211   : > { %v1234_v21 = vpop.permute.xlu1 %1233  ;;  %v1276_v33 = vpop.permute.xlu0 %1275 }
 0x215   : > { %v1318_v23 = vpop.permute.xlu1 %1317  ;;  %v2545_v38 = vpop.permute.xlu0 %1359 }
 0x219   : > { %v1240_v29 = vpop.permute.xlu1 %1239  ;;  %v1282_v41 = vpop.permute.xlu0 %1281 }
 0x21a   : > { %v1244_v30 = vsel %vm287_vm1, %v1234_v21, %v1240_v29  ;;  %v1247_v31 = vsel %vm287_vm1, %v1240_v29, %v1234_v21  ;;  %v1286_v21 = vsel %vm310_vm0, %v1276_v33, %v1282_v41  ;;  %v1289_v57 = vsel %vm310_vm0, %v1282_v41, %v1276_v33 }
 0x21b   : > { %v1263_v2 = vmul.f32 %v1254_v24, %v1247_v31  ;;  %v1264_v35 = vmul.f32 %v1258_v26, %v1244_v30  ;;  %v1327_v29 = vsel %vm334_vm2, %v2480_v60, %v2534_v25  ;;  %v1372_v60 = vsel %vm358_vm3, %v2482_v61, %v2489_v63 }
 0x21c   : > { %v1345_v25 = vmul.f32 %v1338_v52, %v1330_v59 }
 0x21d   : > { %v1900_v36 = vpack.c.bf16 %v1264_v35, %v1262_v34  ;;  %v1902_v37 = vpack.c.bf16 %v1263_v2, %v1261_v32  ;;  %v1324_v42 = vpop.permute.xlu1 %1323  ;;  %v2547_v43 = vpop.permute.xlu0 %1365  ;;  %v1305_v34 = vmul.f32 %v1296_v55, %v1289_v57  ;;  %v1306_v35 = vmul.f32 %v1300_v56, %v1286_v21 }
 0x21e   : > { %v1328_v27 = vsel %vm334_vm2, %v1318_v23, %v1324_v42  ;;  %v1331_v33 = vsel %vm334_vm2, %v1324_v42, %v1318_v23  ;;  %v1370_v61 = vsel %vm358_vm3, %v2545_v38, %v2547_v43  ;;  %v1373_v63 = vsel %vm358_vm3, %v2547_v43, %v2545_v38 }
 0x21f   : > { %1901 = vmatprep.subr.bf16.mxu1 %v1900_v36  ;;  %v1348_v36 = vmul.f32 %v1342_v28, %v1328_v27 }
 0x220   : > { %1903 = vmatpush1.bf16.msra.mxu1 %v1902_v37 }
 0x231   : > { %v1278_v44 = vpop.permute.xlu1 %1277  ;;  %v1236_v46 = vpop.permute.xlu0 %1235 }
 0x235   : > { %v2549_v48 = vpop.permute.xlu1 %1467  ;;  %v2551_v49 = vpop.permute.xlu0 %1425 }
 0x239   : > { %v2553_v50 = vpop.permute.xlu1 %1361  ;;  %v2555_v51 = vpop.permute.xlu0 %1431 }
 0x23d   : > { %v2560_v53 = vpop.permute.xlu1 %1427  ;;  %v1320_v54 = vpop.permute.xlu0 %1319 }
 0x241   : > { %v1242_v0 = vpop.permute.xlu1 %1241  ;;  %v2572_v3 = vpop.permute.xlu0 %1465 }
 0x242   : > { %v1245_v13 = vsel %vm287_vm1, %v1236_v46, %v1242_v0  ;;  %v1248_v20 = vsel %vm287_vm1, %v1242_v0, %v1236_v46  ;;  %v1841_v46 = vld [vmem:[%s2747_s1 + $0x3] ss:$8 sm:$0x3] }
 0x243   : > { %v1265_v58 = vmul.f32 %v1254_v24, %v1248_v20  ;;  %v1266_v22 = vmul.f32 %v1258_v26, %v1245_v13  ;;  %v1384_v0 = vrot.slane %v1841_v46, %v2164_v11 }
 0x245   : > { %v1284_v30 = vpop.permute.xlu1 %1283  ;;  %v2592_v31 = vpop.permute.xlu0 %1471  ;;  %v1904_v32 = vpack.c.bf16 %v1304_v6, %v1266_v22  ;;  %v1906_v2 = vpack.c.bf16 %v1303_v5, %v1265_v58  ;;  %v1388_v22 = vmul.f32 %v1384_v0, %v1369_v12 }
 0x246   : > { %v1287_v24 = vsel %vm310_vm0, %v1278_v44, %v1284_v30  ;;  %v1290_v26 = vsel %vm310_vm0, %v1284_v30, %v1278_v44  ;;  %v1346_v44 = vmul.f32 %v1342_v28, %v1327_v29 }
 0x247   : > { %v1307_v37 = vmul.f32 %v1296_v55, %v1290_v26  ;;  %v1308_v41 = vmul.f32 %v1300_v56, %v1287_v24  ;;  %1905 = vmatprep.subr.bf16.mxu1 %v1904_v32  ;;  %v1347_v55 = vmul.f32 %v1338_v52, %v1331_v33  ;;  %v1380_v56 = vrot.slane %v1841_v46, %v2162_v10 }
 0x248   : > { %1907 = vmatpush1.bf16.msra.mxu1 %v1906_v2  ;;  %v1912_v6 = vpack.c.bf16 %v1348_v36, %v1346_v44  ;;  %v1390_v26 = vmul.f32 %v1384_v0, %v1370_v61  ;;  %v1413_v46 = vmul.f32 %v2508_v8, %v2409_v45  ;;  %v1436_v44 = vsel %vm399_vm4, %v2551_v49, %v2555_v51  ;;  %v1846_v61 = vld [vmem:[%s2747_s1 + $0x10] ss:$8 sm:$0x3] }
 0x249   : > { %v2608_v62 = vpop.permute.xlu1 %1473  ;;  %v1908_v23 = vpack.c.bf16 %v1308_v41, %v1306_v35  ;;  %v1910_v42 = vpack.c.bf16 %v1307_v37, %v1305_v34  ;;  %v2612_v5 = vpop.permute.xlu0 %1469  ;;  %v1914_v57 = vpack.c.bf16 %v1347_v55, %v1345_v25  ;;  %v1387_v58 = vmul.f32 %v1380_v56, %v1372_v60  ;;  %v1845_v60 = vld [vmem:[%s2747_s1 + $0x7] ss:$8 sm:$0x3] }
 0x24a   : > { %v1414_v35 = vmul.f32 %v2505_v7, %v2419_v47  ;;  %v1389_v24 = vmul.f32 %v1380_v56, %v1373_v63  ;;  %v1412_v41 = vmul.f32 %v2505_v7, %v2387_v40  ;;  %v1411_v47 = vmul.f32 %v2508_v8, %v2385_v39  ;;  %v1844_v40 = vld [vmem:[%s2747_s1 + $0x6] ss:$8 sm:$0x3] }
 0x24b   : > { %1909 = vmatprep.subr.bf16.mxu1 %v1908_v23  ;;  %v1439_v45 = vsel %vm399_vm4, %v2555_v51, %v2551_v49  ;;  %v1481_v39 = vsel %vm423_vm5, %v2608_v62, %v2549_v48  ;;  %v1455_v8 = vmul.f32 %v2496_v1, %v1436_v44  ;;  %v1492_v23 = vrot.slane %v1844_v40, %v2164_v11 }
 0x24c   : > { %1911 = vmatpush1.bf16.msra.mxu1 %v1910_v42  ;;  %v1926_v7 = vpack.c.bf16 %v1413_v46, %v1411_v47  ;;  %v1480_v49 = vsel %vm423_vm5, %v2592_v31, %v2572_v3  ;;  %v1478_v15 = vsel %vm423_vm5, %v2549_v48, %v2608_v62  ;;  %v1488_v12 = vrot.slane %v1844_v40, %v2162_v10 }
 0x24d   : > { %v1326_v13 = vpop.permute.xlu1 %1325  ;;  %1913 = vmatprep.subr.bf16.mxu1 %v1912_v6  ;;  %v1508_v30 = vpop.permute.xlu0 %1507  ;;  %v1498_v16 = vmul.f32 %v1492_v23, %v1481_v39  ;;  %v1477_v48 = vsel %vm423_vm5, %v2572_v3, %v2592_v31 }
 0x24e   : > { %v1329_v20 = vsel %vm334_vm2, %v1320_v54, %v1326_v13  ;;  %v1332_v21 = vsel %vm334_vm2, %v1326_v13, %v1320_v54  ;;  %v1530_v13 = vrot.slane %v1845_v60, %v2162_v10 }
 0x24f   : > { %v1349_v27 = vmul.f32 %v1338_v52, %v1332_v21  ;;  %v1350_v29 = vmul.f32 %v1342_v28, %v1329_v20  ;;  %v1534_v20 = vrot.slane %v1845_v60, %v2164_v11 }
 0x250   : > { %1915 = vmatpush1.bf16.msra.mxu1 %v1914_v57 }
 0x251   : > { %v1368_v32 = vpop.permute.xlu1 %1367  ;;  %v1916_v2 = vpack.c.bf16 %v1388_v22, %v1350_v29  ;;  %v1918_v54 = vpack.c.bf16 %v1387_v58, %v1349_v27  ;;  %v1510_v52 = vpop.permute.xlu0 %1509  ;;  %v1495_v58 = vmul.f32 %v1488_v12, %v1477_v48 }
 0x252   : > { %v1371_v34 = vsel %vm358_vm3, %v2553_v50, %v1368_v32  ;;  %v1374_v28 = vsel %vm358_vm3, %v1368_v32, %v2553_v50  ;;  %v1924_v50 = vpack.c.bf16 %v1414_v35, %v1412_v41  ;;  %v1572_v35 = vrot.slane %v1846_v61, %v2162_v10 }
 0x253   : > { %v1391_v33 = vmul.f32 %v1380_v56, %v1374_v28  ;;  %v1392_v38 = vmul.f32 %v1384_v0, %v1371_v34  ;;  %1917 = vmatprep.subr.bf16.mxu1 %v1916_v2  ;;  %v1456_v56 = vmul.f32 %v2499_v4, %v1439_v45 }
 0x254   : > { %1919 = vmatpush1.bf16.msra.mxu1 %v1918_v54 }
 0x255   : > { %v1514_v43 = vpop.permute.xlu1 %1513  ;;  %v1920_v36 = vpack.c.bf16 %v1392_v38, %v1390_v26  ;;  %v1922_v37 = vpack.c.bf16 %v1391_v33, %v1389_v24  ;;  %v1516_v42 = vpop.permute.xlu0 %1515  ;;  %v1576_v24 = vrot.slane %v1846_v61, %v2164_v11 }
 0x256   : > { %v1519_v14 = vsel %vm447_vm6, %v1508_v30, %v1514_v43  ;;  %v1522_v17 = vsel %vm447_vm6, %v1514_v43, %v1508_v30  ;;  %v1520_v32 = vsel %vm447_vm6, %v1510_v52, %v1516_v42  ;;  %v1523_v2 = vsel %vm447_vm6, %v1516_v42, %v1510_v52 }
 0x257   : > { %1921 = vmatprep.subr.bf16.mxu1 %v1920_v36  ;;  %v1537_v27 = vmul.f32 %v1530_v13, %v1519_v14  ;;  %v1538_v29 = vmul.f32 %v1534_v20, %v1522_v17  ;;  %v1539_v38 = vmul.f32 %v1530_v13, %v1520_v32  ;;  %v1540_v43 = vmul.f32 %v1534_v20, %v1523_v2 }
 0x258   : > { %1923 = vmatpush1.bf16.msra.mxu1 %v1922_v37 }
 0x259   : > { %v1512_v59 = vpop.permute.xlu1 %1511  ;;  %1925 = vmatprep.subr.bf16.mxu1 %v1924_v50  ;;  %v1550_v21 = vpop.permute.xlu0 %1549 }
 0x25c   : > { %1927 = vmatpush1.bf16.msra.mxu1 %v1926_v7 }
 0x25d   : > { %v1434_v55 = vpop.permute.xlu1 %1433  ;;  %1929 = vmatprep.subr.bf16.mxu1 %v1928_v18  ;;  %v1556_v54 = vpop.permute.xlu0 %1555 }
 0x25e   : > { %v1437_v51 = vsel %vm399_vm4, %v2560_v53, %v1434_v55  ;;  %v1440_v0 = vsel %vm399_vm4, %v1434_v55, %v2560_v53  ;;  %v1496_v53 = vmul.f32 %v1492_v23, %v1480_v49  ;;  %v1561_v41 = vsel %vm471_vm7, %v1550_v21, %v1556_v54 }
 0x25f   : > { %v1457_v18 = vmul.f32 %v2496_v1, %v1437_v51  ;;  %v1458_v6 = vmul.f32 %v2499_v4, %v1440_v0  ;;  %v1497_v4 = vmul.f32 %v1488_v12, %v1478_v15  ;;  %v1564_v46 = vsel %vm471_vm7, %v1556_v54, %v1550_v21  ;;  %v1591_v51 = vld [vmem:[%s2750_s4] sm:$0xff] }
 0x260   : > { %1931 = vmatpush1.bf16.msra.mxu1 %v1930_v19  ;;  %v1936_v57 = vpack.c.bf16 %v1498_v16, %v1496_v53  ;;  %v1580_v44 = vmul.f32 %v1576_v24, %v1564_v46  ;;  %v1647_v0 = vld [vmem:[%s2078_s29] sm:$0xff]  ;;  %v1648_v16 = vld [vmem:[%s2078_s29 + $0x8] sm:$0xff] }
 0x261   : > { %v1552_v62 = vpop.permute.xlu1 %1551  ;;  %v1932_v1 = vpack.c.bf16 %v1458_v6, %v1456_v56  ;;  %v1934_v25 = vpack.c.bf16 %v1457_v18, %v1455_v8  ;;  %v1938_v22 = vpack.c.bf16 %v1497_v4, %v1495_v58  ;;  %v1554_v45 = vpop.permute.xlu0 %1553 }
 0x263   : > { %1933 = vmatprep.subr.bf16.mxu1 %v1932_v1 }
 0x264   : > { %1935 = vmatpush1.bf16.msra.mxu1 %v1934_v25 }
 0x265   : > { %v1476_v19 = vpop.permute.xlu1 %1475  ;;  %1937 = vmatprep.subr.bf16.mxu1 %v1936_v57 }
 0x266   : > { %v1479_v3 = vsel %vm423_vm5, %v2612_v5, %v1476_v19  ;;  %v1482_v31 = vsel %vm423_vm5, %v1476_v19, %v2612_v5 }
 0x267   : > { %v1499_v63 = vmul.f32 %v1488_v12, %v1479_v3  ;;  %v1500_v30 = vmul.f32 %v1492_v23, %v1482_v31 }
 0x268   : > { %1939 = vmatpush1.bf16.msra.mxu1 %v1938_v22 }
 0x269   : > { %v1518_v34 = vpop.permute.xlu1 %1517  ;;  %v1940_v28 = vpack.c.bf16 %v1538_v29, %v1500_v30  ;;  %v1942_v5 = vpack.c.bf16 %v1537_v27, %v1499_v63 }
 0x26a   : > { %v1521_v26 = vsel %vm447_vm6, %v1512_v59, %v1518_v34  ;;  %v1524_v33 = vsel %vm447_vm6, %v1518_v34, %v1512_v59  ;;  %v1579_v59 = vmul.f32 %v1572_v35, %v1561_v41 }
 0x26b   : > { %v1541_v36 = vmul.f32 %v1530_v13, %v1521_v26  ;;  %v1542_v37 = vmul.f32 %v1534_v20, %v1524_v33  ;;  %1941 = vmatprep.subr.bf16.mxu1 %v1940_v28 }
 0x26c   : > { %1943 = vmatpush1.bf16.msra.mxu1 %v1942_v5 }
 0x26d   : > { %v1558_v10 = vpop.permute.xlu1 %1557  ;;  %v1944_v11 = vpack.c.bf16 %v1542_v37, %v1540_v43  ;;  %v1946_v52 = vpack.c.bf16 %v1541_v36, %v1539_v38 }
 0x26e   : > { %v1562_v50 = vsel %vm471_vm7, %v1552_v62, %v1558_v10  ;;  %v1565_v47 = vsel %vm471_vm7, %v1558_v10, %v1552_v62 }
 0x26f   : > { %v1581_v40 = vmul.f32 %v1572_v35, %v1562_v50  ;;  %v1582_v7 = vmul.f32 %v1576_v24, %v1565_v47  ;;  %1945 = vmatprep.subr.bf16.mxu1 %v1944_v11 }
 0x270   : > { %1947 = vmatpush1.bf16.msra.mxu1 %v1946_v52 }
 0x271   : > { %v1560_v39 = vpop.permute.xlu1 %1559  ;;  %v1948_v8 = vpack.c.bf16 %v1582_v7, %v1580_v44  ;;  %v1950_v23 = vpack.c.bf16 %v1581_v40, %v1579_v59 }
 0x272   : > { %v1566_v42 = vsel %vm471_vm7, %v1560_v39, %v1554_v45  ;;  %v1563_v55 = vsel %vm471_vm7, %v1554_v45, %v1560_v39  ;;  %v1653_v15 = vpop.permute.xlu0 %1652 }
 0x273   : > { %v1584_v56 = vmul.f32 %v1576_v24, %v1566_v42  ;;  %1949 = vmatprep.subr.bf16.mxu1 %v1948_v8  ;;  %v1583_v49 = vmul.f32 %v1572_v35, %v1563_v55  ;;  %v1655_v18 = vmul.f32 %v1653_v15, %v1647_v0  ;;  %v1656_v6 = vmul.f32 %v1653_v15, %v1648_v16 }
 0x274   : > { %1951 = vmatpush1.bf16.msra.mxu1 %v1950_v23 }
 0x275   : > { %1713 = vmatprep.subr.mxu1 %v1584_v56 }
 0x278   : > { %1714 = vmatpush1.msra.mxu1 %v1583_v49 }
 0x279   : > { %1726 = vmatmul.mubr.f32.vlgmr.msra.gmra.mrb[0].mxu1 %v1591_v51 }
 0x282   : > { %v1736_v48 = vpop.permute.xlu1 %1735 }
 0x34c   : > { %v1727_v12 = vpop.f32.mrb[0].mxu1 }
 0x34d   : > { %v1728_v9 = vadd.f32 %v1727_v12, %v1655_v18  ;;  %v1729_v60 = vpop.f32.mrb[1].mxu1 }
 0x34e   : > { %v1730_v53 = vadd.f32 %v1729_v60, %v1656_v6 }
 0x34f   : > { %v1738_v62 = vadd.f32 %v1736_v48, %v1728_v9 }
 0x350   : > { %v1739_v1 = vadd.f32 %v1736_v48, %v1730_v53 }
 0x351   : > { %v1740_v25 = vmax.f32 %v1738_v62, 0.0 }
 0x352   : > { %v1741_v4 = vmax.f32 %v1739_v1, 0.0 }
 0x353   : > { %1742 = vst [vmem:[%s278_s22] sm:$0xff] %v1740_v25 }
 0x354   : > { %1743 = vst [vmem:[%s278_s22 + $0x8] sm:$0xff] %v1741_v4 }
 0x355 PF: > { %s17_s24 = sadd.s32 1, %s1994_s24  }
 0x356   : > { %p14_p4 = scmp.ge.s32.totalorder %s17_s24, 4  }
 0x358   :  { %16 = sbr.rel (!%p14_p4) target bundleno = 1 (0x1), region = 106 }

</bundles_post_ra>
